<compile_context>
chip_gen: v6e
topology: v6e:2x2x1
jax: 0.10.0
libtpu: 0.0.40
codegen_flags: <defaults>
</compile_context>

<pallas_src>
import jax
import jax.numpy as jnp
from jax import lax
from jax.experimental import pallas as pl
from jax.experimental.pallas import tpu as pltpu

WORD_EMB_DIM = 100
POS_EMB_DIM = 50
HIDDEN_DIM = 400
N_TOKENS = 6                                            # 6 word ids + 6 pos ids
INPUT_DIM = N_TOKENS * (WORD_EMB_DIM + POS_EMB_DIM)     # 900

LANE = 128
EMB_PAD = 128                       # per-slot embedding width inside the kernel
K_PAD = 2 * N_TOKENS * EMB_PAD      # 1536: kernel-side fc1 contraction dim
H_PAD = 512                         # hidden 400 -> 512
NEG_INF = -1e30


def _round_up(x, m):
    return (x + m - 1) // m * m


def _pick_tile_b(batch):
    """Largest batch tile whose padding waste stays ~<=12.5% of real rows."""
    best = 8
    for t in (16, 32, 64, 128, 256, 512, 1024, 2048):
        b_pad = _round_up(batch, t)
        if (b_pad - batch <= batch // 8) or (b_pad == _round_up(batch, 8)):
            best = t
    return best


def mlp_kernel(ids_ref, wemb_ref, pemb_ref, w1_ref, b1_ref, w2_ref, b2_ref,
               out_ref, feat_ref):
    tile_b = ids_ref.shape[0]
    ids = ids_ref[...]                                   # (tile_b, 12) int32

    # ---- Fused embedding lookup: per-slot one-hot bf16 matmul on the MXU. ----
    # TODO(synk): for large vocabularies replace the one-hot matmul with a manual
    # DMA row-gather (memory_space=pl.ANY + pltpu.make_async_copy).
    wv = wemb_ref.shape[0]
    pv = pemb_ref.shape[0]
    iota_w = lax.broadcasted_iota(jnp.int32, (tile_b, wv), 1)
    iota_p = lax.broadcasted_iota(jnp.int32, (tile_b, pv), 1)
    for s in range(N_TOKENS):
        oh = (ids[:, s:s + 1] == iota_w).astype(jnp.bfloat16)
        e = jnp.dot(oh, wemb_ref[...], preferred_element_type=jnp.float32)
        feat_ref[:, s * EMB_PAD:(s + 1) * EMB_PAD] = e.astype(jnp.bfloat16)
    for s in range(N_TOKENS):
        oh = (ids[:, N_TOKENS + s:N_TOKENS + s + 1] == iota_p).astype(jnp.bfloat16)
        e = jnp.dot(oh, pemb_ref[...], preferred_element_type=jnp.float32)
        feat_ref[:, (N_TOKENS + s) * EMB_PAD:(N_TOKENS + s + 1) * EMB_PAD] = (
            e.astype(jnp.bfloat16))

    # ---- fc1 + ReLU (bf16 MXU operands, f32 accumulate, f32 VPU epilogue). ----
    h = jnp.dot(feat_ref[...], w1_ref[...], preferred_element_type=jnp.float32)
    h = jnp.maximum(h + b1_ref[...], 0.0)
    # Dropout is the identity at inference (nn.Dropout in eval mode).
    # TODO(synk): training-mode dropout (Bernoulli mask via pltpu.prng_*) not implemented.

    # ---- fc2 + numerically-stable log_softmax (lane-dense 128-wide). ----
    logits = jnp.dot(h.astype(jnp.bfloat16), w2_ref[...],
                     preferred_element_type=jnp.float32)
    logits = logits + b2_ref[...]                        # padded columns carry -1e30
    m = jnp.max(logits, axis=-1, keepdims=True)
    shifted = logits - m
    lse = jnp.log(jnp.sum(jnp.exp(shifted), axis=-1, keepdims=True))
    out_ref[...] = shifted - lse


def _resident_spec(shape):
    # Fetched once, never revisited -> single buffer saves VMEM.
    return pl.BlockSpec(shape, lambda i: (0, 0), pipeline_mode=pl.Buffered(1))


@jax.jit
def word_pos_forward(x, params):
    """x: (B, 12) int32 — first 6 columns word ids, last 6 POS ids."""
    batch = x.shape[0]
    word_vocab = params["word_embedding"].shape[0]
    pos_vocab = params["pos_embedding"].shape[0]
    out_size = params["b2"].shape[-1]

    out_pad = _round_up(out_size, LANE)
    wv_pad = _round_up(word_vocab, LANE)
    pv_pad = _round_up(pos_vocab, LANE)

    tile_b = _pick_tile_b(batch)
    b_pad = _round_up(batch, tile_b)

    # Only the ids are streamed per tile; padding rows use id 0 (sliced off later).
    ids = jnp.pad(x.astype(jnp.int32), ((0, b_pad - batch), (0, 0)))

    # Embedding tables, zero-padded to lane-aligned shapes, bf16 MXU operands.
    wemb = jnp.pad(params["word_embedding"],
                   ((0, wv_pad - word_vocab), (0, EMB_PAD - WORD_EMB_DIM))
                   ).astype(jnp.bfloat16)
    pemb = jnp.pad(params["pos_embedding"],
                   ((0, pv_pad - pos_vocab), (0, EMB_PAD - POS_EMB_DIM))
                   ).astype(jnp.bfloat16)

    # Rearrange fc1 rows to the kernel's per-slot 128-padded feature layout:
    # [word slot 0..5 (128 each) | pos slot 0..5 (128 each)] -> (1536, 512).
    # Original feat layout was [w_s(100) | p_s(50)] per slot s, flattened.
    w1 = params["w1"].reshape(N_TOKENS, WORD_EMB_DIM + POS_EMB_DIM, HIDDEN_DIM)
    w1_word = jnp.pad(w1[:, :WORD_EMB_DIM, :],
                      ((0, 0), (0, EMB_PAD - WORD_EMB_DIM), (0, H_PAD - HIDDEN_DIM)))
    w1_pos = jnp.pad(w1[:, WORD_EMB_DIM:, :],
                     ((0, 0), (0, EMB_PAD - POS_EMB_DIM), (0, H_PAD - HIDDEN_DIM)))
    w1_k = jnp.concatenate(
        [w1_word.reshape(N_TOKENS * EMB_PAD, H_PAD),
         w1_pos.reshape(N_TOKENS * EMB_PAD, H_PAD)], axis=0).astype(jnp.bfloat16)

    b1 = jnp.pad(params["b1"], ((0, 0), (0, H_PAD - HIDDEN_DIM))).astype(jnp.float32)
    w2 = jnp.pad(params["w2"],
                 ((0, H_PAD - HIDDEN_DIM), (0, out_pad - out_size))).astype(jnp.bfloat16)
    # Padded classifier columns get -1e30 so exp() kills them in log_softmax.
    b2 = jnp.pad(params["b2"], ((0, 0), (0, out_pad - out_size)),
                 constant_values=NEG_INF).astype(jnp.float32)

    grid = (b_pad // tile_b,)
    cost = pl.CostEstimate(
        flops=2 * b_pad * (N_TOKENS * (wv_pad + pv_pad) * EMB_PAD
                           + K_PAD * H_PAD + H_PAD * out_pad),
        transcendentals=b_pad * (out_pad + 1),
        bytes_accessed=(ids.size * 4 + wemb.size * 2 + pemb.size * 2
                        + w1_k.size * 2 + w2.size * 2 + b1.size * 4 + b2.size * 4
                        + b_pad * out_pad * 4),
    )

    out = pl.pallas_call(
        mlp_kernel,
        out_shape=jax.ShapeDtypeStruct((b_pad, out_pad), jnp.float32),
        grid_spec=pltpu.PrefetchScalarGridSpec(
            num_scalar_prefetch=0,
            grid=grid,
            in_specs=[
                pl.BlockSpec((tile_b, 2 * N_TOKENS), lambda i: (i, 0)),  # ids tile
                _resident_spec((wv_pad, EMB_PAD)),                       # word table
                _resident_spec((pv_pad, EMB_PAD)),                       # pos table
                _resident_spec((K_PAD, H_PAD)),                          # w1 (rearranged)
                _resident_spec((1, H_PAD)),                              # b1
                _resident_spec((H_PAD, out_pad)),                        # w2
                _resident_spec((1, out_pad)),                            # b2
            ],
            out_specs=pl.BlockSpec((tile_b, out_pad), lambda i: (i, 0)),
            scratch_shapes=[pltpu.VMEM((tile_b, K_PAD), jnp.bfloat16)],  # feat tile
        ),
        compiler_params=pltpu.CompilerParams(
            dimension_semantics=("parallel",)),
        cost_estimate=cost,
    )(ids, wemb, pemb, w1_k, b1, w2, b2)

    # Strip batch / class padding (never consume out[:, out_size:] — it is ~-1e30).
    return out[:batch, :out_size]


def init_params(key, word_vocab_size, pos_vocab_size, output_size):
    k = jax.random.split(key, 6)
    scale = 0.1
    return {
        "word_embedding": scale * jax.random.normal(
            k[0], (word_vocab_size, WORD_EMB_DIM), jnp.float32),
        "pos_embedding": scale * jax.random.normal(
            k[1], (pos_vocab_size, POS_EMB_DIM), jnp.float32),
        "w1": scale * jax.random.normal(k[2], (INPUT_DIM, HIDDEN_DIM), jnp.float32),
        "b1": scale * jax.random.normal(k[3], (1, HIDDEN_DIM), jnp.float32),
        "w2": scale * jax.random.normal(k[4], (HIDDEN_DIM, output_size), jnp.float32),
        "b2": scale * jax.random.normal(k[5], (1, output_size), jnp.float32),
    }


def reference_forward(x, params):
    """Pure-JAX f32 reference mirroring the PyTorch forward (eval mode)."""
    batch = x.shape[0]
    w_emb = jnp.take(params["word_embedding"], x[:, :N_TOKENS], axis=0)
    p_emb = jnp.take(params["pos_embedding"], x[:, N_TOKENS:], axis=0)
    feat = jnp.concatenate([w_emb, p_emb], axis=-1).reshape(batch, -1)
    h = jnp.maximum(feat @ params["w1"] + params["b1"], 0.0)
    logits = h @ params["w2"] + params["b2"]
    return jax.nn.log_softmax(logits, axis=-1)


if __name__ == "__main__":
    word_vocab_size = 100
    pos_vocab_size = 20
    output_size = 48
    batch = 8

    key = jax.random.PRNGKey(0)
    k_params, k_word, k_pos = jax.random.split(key, 3)

    params = init_params(k_params, word_vocab_size, pos_vocab_size, output_size)

    word_ids = jax.random.randint(k_word, (batch, N_TOKENS), 0, word_vocab_size, jnp.int32)
    pos_ids = jax.random.randint(k_pos, (batch, N_TOKENS), 0, pos_vocab_size, jnp.int32)
    x = jnp.concatenate([word_ids, pos_ids], axis=-1)    # (B, 12) int32

    out = jax.block_until_ready(word_pos_forward(x, params))
    ref = reference_forward(x, params)

    assert out.shape == (batch, output_size)
    # bf16 MXU operands (f32 accumulate) -> relaxed tolerance vs the f32 reference.
    max_err = float(jnp.max(jnp.abs(out - ref)))
    assert jnp.allclose(out, ref, atol=5e-2, rtol=5e-2), f"max_err={max_err}"
    # Valid log-probabilities: rows exponentiate-sum to 1 (padding handled right).
    assert jnp.allclose(jnp.sum(jnp.exp(out), axis=-1), 1.0, atol=1e-3)

    print("KERNEL_OK")
</pallas_src>

<mosaic_0001>
module attributes {stable_mosaic.version = 11 : i64} {
  func.func @mlp_kernel(%arg0: i32, %arg1: memref<8x12xi32, #tpu.memory_space<vmem>>, %arg2: memref<128x128xbf16, #tpu.memory_space<vmem>>, %arg3: memref<128x128xbf16, #tpu.memory_space<vmem>>, %arg4: memref<1536x512xbf16, #tpu.memory_space<vmem>>, %arg5: memref<1x512xf32, #tpu.memory_space<vmem>>, %arg6: memref<512x128xbf16, #tpu.memory_space<vmem>>, %arg7: memref<1x128xf32, #tpu.memory_space<vmem>>, %arg8: memref<8x128xf32, #tpu.memory_space<vmem>>, %arg9: memref<8x1536xbf16, #tpu.memory_space<vmem>>) attributes {dimension_semantics = [#tpu.dimension_semantics<parallel>], iteration_bounds = array<i64: 1>, scalar_prefetch = 0 : i64, scratch_operands = 1 : i64, tpu.core_type = #tpu.core_type<tc>, window_params = [{transform_indices = @transform_0, window_bounds = array<i64: 8, 12>}, {pipeline_mode = #tpu.pipeline_mode<synchronous>, transform_indices = @transform_1, window_bounds = array<i64: 128, 128>}, {pipeline_mode = #tpu.pipeline_mode<synchronous>, transform_indices = @transform_2, window_bounds = array<i64: 128, 128>}, {pipeline_mode = #tpu.pipeline_mode<synchronous>, transform_indices = @transform_3, window_bounds = array<i64: 1536, 512>}, {pipeline_mode = #tpu.pipeline_mode<synchronous>, transform_indices = @transform_4, window_bounds = array<i64: 1, 512>}, {pipeline_mode = #tpu.pipeline_mode<synchronous>, transform_indices = @transform_5, window_bounds = array<i64: 512, 128>}, {pipeline_mode = #tpu.pipeline_mode<synchronous>, transform_indices = @transform_6, window_bounds = array<i64: 1, 128>}, {transform_indices = @transform_7, window_bounds = array<i64: 8, 128>}]} {
    %c0 = arith.constant 0 : index
    %c0_0 = arith.constant 0 : index
    %0 = vector.load %arg1[%c0, %c0_0] : memref<8x12xi32, #tpu.memory_space<vmem>>, vector<8x12xi32>
    %1 = tpu.iota {dimensions = array<i32: 1>} : vector<8x128xi32>
    %2 = tpu.iota {dimensions = array<i32: 1>} : vector<8x128xi32>
    %3 = vector.extract_strided_slice %0 {offsets = [0, 0], sizes = [8, 1], strides = [1, 1]} : vector<8x12xi32> to vector<8x1xi32>
    %4 = vector.broadcast %3 : vector<8x1xi32> to vector<8x128xi32>
    %5 = arith.cmpi eq, %4, %1 : vector<8x128xi32>
    %6 = arith.extui %5 : vector<8x128xi1> to vector<8x128xi32>
    %7 = arith.sitofp %6 : vector<8x128xi32> to vector<8x128xf32>
    %8 = arith.truncf %7 : vector<8x128xf32> to vector<8x128xbf16>
    %c0_1 = arith.constant 0 : index
    %c0_2 = arith.constant 0 : index
    %9 = vector.load %arg2[%c0_1, %c0_2] : memref<128x128xbf16, #tpu.memory_space<vmem>>, vector<128x128xbf16>
    %cst = arith.constant dense<0.000000e+00> : vector<8x128xf32>
    %10 = tpu.matmul %8, %9, %cst {dimension_numbers = #tpu.dot_dimension_numbers<[1], [0], [0], [1], [0, 0, 1, 1], [], []>} : vector<8x128xbf16>, vector<128x128xbf16>, vector<8x128xf32> -> vector<8x128xf32>
    %11 = arith.truncf %10 : vector<8x128xf32> to vector<8x128xbf16>
    %c0_3 = arith.constant 0 : index
    %c0_4 = arith.constant 0 : index
    %12 = vector.load %arg9[%c0_3, %c0_4] : memref<8x1536xbf16, #tpu.memory_space<vmem>>, vector<8x128xbf16>
    tpu.vector_store %arg9[%c0_3, %c0_4], %11 {strides = array<i32>} : memref<8x1536xbf16, #tpu.memory_space<vmem>>, vector<8x128xbf16>,
    %13 = vector.extract_strided_slice %0 {offsets = [0, 1], sizes = [8, 1], strides = [1, 1]} : vector<8x12xi32> to vector<8x1xi32>
    %14 = vector.broadcast %13 : vector<8x1xi32> to vector<8x128xi32>
    %15 = arith.cmpi eq, %14, %1 : vector<8x128xi32>
    %16 = arith.extui %15 : vector<8x128xi1> to vector<8x128xi32>
    %17 = arith.sitofp %16 : vector<8x128xi32> to vector<8x128xf32>
    %18 = arith.truncf %17 : vector<8x128xf32> to vector<8x128xbf16>
    %c0_5 = arith.constant 0 : index
    %c0_6 = arith.constant 0 : index
    %19 = vector.load %arg2[%c0_5, %c0_6] : memref<128x128xbf16, #tpu.memory_space<vmem>>, vector<128x128xbf16>
    %cst_7 = arith.constant dense<0.000000e+00> : vector<8x128xf32>
    %20 = tpu.matmul %18, %19, %cst_7 {dimension_numbers = #tpu.dot_dimension_numbers<[1], [0], [0], [1], [0, 0, 1, 1], [], []>} : vector<8x128xbf16>, vector<128x128xbf16>, vector<8x128xf32> -> vector<8x128xf32>
    %21 = arith.truncf %20 : vector<8x128xf32> to vector<8x128xbf16>
    %c0_8 = arith.constant 0 : index
    %c128 = arith.constant 128 : index
    %22 = vector.load %arg9[%c0_8, %c128] : memref<8x1536xbf16, #tpu.memory_space<vmem>>, vector<8x128xbf16>
    tpu.vector_store %arg9[%c0_8, %c128], %21 {strides = array<i32>} : memref<8x1536xbf16, #tpu.memory_space<vmem>>, vector<8x128xbf16>,
    %23 = vector.extract_strided_slice %0 {offsets = [0, 2], sizes = [8, 1], strides = [1, 1]} : vector<8x12xi32> to vector<8x1xi32>
    %24 = vector.broadcast %23 : vector<8x1xi32> to vector<8x128xi32>
    %25 = arith.cmpi eq, %24, %1 : vector<8x128xi32>
    %26 = arith.extui %25 : vector<8x128xi1> to vector<8x128xi32>
    %27 = arith.sitofp %26 : vector<8x128xi32> to vector<8x128xf32>
    %28 = arith.truncf %27 : vector<8x128xf32> to vector<8x128xbf16>
    %c0_9 = arith.constant 0 : index
    %c0_10 = arith.constant 0 : index
    %29 = vector.load %arg2[%c0_9, %c0_10] : memref<128x128xbf16, #tpu.memory_space<vmem>>, vector<128x128xbf16>
    %cst_11 = arith.constant dense<0.000000e+00> : vector<8x128xf32>
    %30 = tpu.matmul %28, %29, %cst_11 {dimension_numbers = #tpu.dot_dimension_numbers<[1], [0], [0], [1], [0, 0, 1, 1], [], []>} : vector<8x128xbf16>, vector<128x128xbf16>, vector<8x128xf32> -> vector<8x128xf32>
    %31 = arith.truncf %30 : vector<8x128xf32> to vector<8x128xbf16>
    %c0_12 = arith.constant 0 : index
    %c256 = arith.constant 256 : index
    %32 = vector.load %arg9[%c0_12, %c256] : memref<8x1536xbf16, #tpu.memory_space<vmem>>, vector<8x128xbf16>
    tpu.vector_store %arg9[%c0_12, %c256], %31 {strides = array<i32>} : memref<8x1536xbf16, #tpu.memory_space<vmem>>, vector<8x128xbf16>,
    %33 = vector.extract_strided_slice %0 {offsets = [0, 3], sizes = [8, 1], strides = [1, 1]} : vector<8x12xi32> to vector<8x1xi32>
    %34 = vector.broadcast %33 : vector<8x1xi32> to vector<8x128xi32>
    %35 = arith.cmpi eq, %34, %1 : vector<8x128xi32>
    %36 = arith.extui %35 : vector<8x128xi1> to vector<8x128xi32>
    %37 = arith.sitofp %36 : vector<8x128xi32> to vector<8x128xf32>
    %38 = arith.truncf %37 : vector<8x128xf32> to vector<8x128xbf16>
    %c0_13 = arith.constant 0 : index
    %c0_14 = arith.constant 0 : index
    %39 = vector.load %arg2[%c0_13, %c0_14] : memref<128x128xbf16, #tpu.memory_space<vmem>>, vector<128x128xbf16>
    %cst_15 = arith.constant dense<0.000000e+00> : vector<8x128xf32>
    %40 = tpu.matmul %38, %39, %cst_15 {dimension_numbers = #tpu.dot_dimension_numbers<[1], [0], [0], [1], [0, 0, 1, 1], [], []>} : vector<8x128xbf16>, vector<128x128xbf16>, vector<8x128xf32> -> vector<8x128xf32>
    %41 = arith.truncf %40 : vector<8x128xf32> to vector<8x128xbf16>
    %c0_16 = arith.constant 0 : index
    %c384 = arith.constant 384 : index
    %42 = vector.load %arg9[%c0_16, %c384] : memref<8x1536xbf16, #tpu.memory_space<vmem>>, vector<8x128xbf16>
    tpu.vector_store %arg9[%c0_16, %c384], %41 {strides = array<i32>} : memref<8x1536xbf16, #tpu.memory_space<vmem>>, vector<8x128xbf16>,
    %43 = vector.extract_strided_slice %0 {offsets = [0, 4], sizes = [8, 1], strides = [1, 1]} : vector<8x12xi32> to vector<8x1xi32>
    %44 = vector.broadcast %43 : vector<8x1xi32> to vector<8x128xi32>
    %45 = arith.cmpi eq, %44, %1 : vector<8x128xi32>
    %46 = arith.extui %45 : vector<8x128xi1> to vector<8x128xi32>
    %47 = arith.sitofp %46 : vector<8x128xi32> to vector<8x128xf32>
    %48 = arith.truncf %47 : vector<8x128xf32> to vector<8x128xbf16>
    %c0_17 = arith.constant 0 : index
    %c0_18 = arith.constant 0 : index
    %49 = vector.load %arg2[%c0_17, %c0_18] : memref<128x128xbf16, #tpu.memory_space<vmem>>, vector<128x128xbf16>
    %cst_19 = arith.constant dense<0.000000e+00> : vector<8x128xf32>
    %50 = tpu.matmul %48, %49, %cst_19 {dimension_numbers = #tpu.dot_dimension_numbers<[1], [0], [0], [1], [0, 0, 1, 1], [], []>} : vector<8x128xbf16>, vector<128x128xbf16>, vector<8x128xf32> -> vector<8x128xf32>
    %51 = arith.truncf %50 : vector<8x128xf32> to vector<8x128xbf16>
    %c0_20 = arith.constant 0 : index
    %c512 = arith.constant 512 : index
    %52 = vector.load %arg9[%c0_20, %c512] : memref<8x1536xbf16, #tpu.memory_space<vmem>>, vector<8x128xbf16>
    tpu.vector_store %arg9[%c0_20, %c512], %51 {strides = array<i32>} : memref<8x1536xbf16, #tpu.memory_space<vmem>>, vector<8x128xbf16>,
    %53 = vector.extract_strided_slice %0 {offsets = [0, 5], sizes = [8, 1], strides = [1, 1]} : vector<8x12xi32> to vector<8x1xi32>
    %54 = vector.broadcast %53 : vector<8x1xi32> to vector<8x128xi32>
    %55 = arith.cmpi eq, %54, %1 : vector<8x128xi32>
    %56 = arith.extui %55 : vector<8x128xi1> to vector<8x128xi32>
    %57 = arith.sitofp %56 : vector<8x128xi32> to vector<8x128xf32>
    %58 = arith.truncf %57 : vector<8x128xf32> to vector<8x128xbf16>
    %c0_21 = arith.constant 0 : index
    %c0_22 = arith.constant 0 : index
    %59 = vector.load %arg2[%c0_21, %c0_22] : memref<128x128xbf16, #tpu.memory_space<vmem>>, vector<128x128xbf16>
    %cst_23 = arith.constant dense<0.000000e+00> : vector<8x128xf32>
    %60 = tpu.matmul %58, %59, %cst_23 {dimension_numbers = #tpu.dot_dimension_numbers<[1], [0], [0], [1], [0, 0, 1, 1], [], []>} : vector<8x128xbf16>, vector<128x128xbf16>, vector<8x128xf32> -> vector<8x128xf32>
    %61 = arith.truncf %60 : vector<8x128xf32> to vector<8x128xbf16>
    %c0_24 = arith.constant 0 : index
    %c640 = arith.constant 640 : index
    %62 = vector.load %arg9[%c0_24, %c640] : memref<8x1536xbf16, #tpu.memory_space<vmem>>, vector<8x128xbf16>
    tpu.vector_store %arg9[%c0_24, %c640], %61 {strides = array<i32>} : memref<8x1536xbf16, #tpu.memory_space<vmem>>, vector<8x128xbf16>,
    %63 = vector.extract_strided_slice %0 {offsets = [0, 6], sizes = [8, 1], strides = [1, 1]} : vector<8x12xi32> to vector<8x1xi32>
    %64 = vector.broadcast %63 : vector<8x1xi32> to vector<8x128xi32>
    %65 = arith.cmpi eq, %64, %2 : vector<8x128xi32>
    %66 = arith.extui %65 : vector<8x128xi1> to vector<8x128xi32>
    %67 = arith.sitofp %66 : vector<8x128xi32> to vector<8x128xf32>
    %68 = arith.truncf %67 : vector<8x128xf32> to vector<8x128xbf16>
    %c0_25 = arith.constant 0 : index
    %c0_26 = arith.constant 0 : index
    %69 = vector.load %arg3[%c0_25, %c0_26] : memref<128x128xbf16, #tpu.memory_space<vmem>>, vector<128x128xbf16>
    %cst_27 = arith.constant dense<0.000000e+00> : vector<8x128xf32>
    %70 = tpu.matmul %68, %69, %cst_27 {dimension_numbers = #tpu.dot_dimension_numbers<[1], [0], [0], [1], [0, 0, 1, 1], [], []>} : vector<8x128xbf16>, vector<128x128xbf16>, vector<8x128xf32> -> vector<8x128xf32>
    %71 = arith.truncf %70 : vector<8x128xf32> to vector<8x128xbf16>
    %c0_28 = arith.constant 0 : index
    %c768 = arith.constant 768 : index
    %72 = vector.load %arg9[%c0_28, %c768] : memref<8x1536xbf16, #tpu.memory_space<vmem>>, vector<8x128xbf16>
    tpu.vector_store %arg9[%c0_28, %c768], %71 {strides = array<i32>} : memref<8x1536xbf16, #tpu.memory_space<vmem>>, vector<8x128xbf16>,
    %73 = vector.extract_strided_slice %0 {offsets = [0, 7], sizes = [8, 1], strides = [1, 1]} : vector<8x12xi32> to vector<8x1xi32>
    %74 = vector.broadcast %73 : vector<8x1xi32> to vector<8x128xi32>
    %75 = arith.cmpi eq, %74, %2 : vector<8x128xi32>
    %76 = arith.extui %75 : vector<8x128xi1> to vector<8x128xi32>
    %77 = arith.sitofp %76 : vector<8x128xi32> to vector<8x128xf32>
    %78 = arith.truncf %77 : vector<8x128xf32> to vector<8x128xbf16>
    %c0_29 = arith.constant 0 : index
    %c0_30 = arith.constant 0 : index
    %79 = vector.load %arg3[%c0_29, %c0_30] : memref<128x128xbf16, #tpu.memory_space<vmem>>, vector<128x128xbf16>
    %cst_31 = arith.constant dense<0.000000e+00> : vector<8x128xf32>
    %80 = tpu.matmul %78, %79, %cst_31 {dimension_numbers = #tpu.dot_dimension_numbers<[1], [0], [0], [1], [0, 0, 1, 1], [], []>} : vector<8x128xbf16>, vector<128x128xbf16>, vector<8x128xf32> -> vector<8x128xf32>
    %81 = arith.truncf %80 : vector<8x128xf32> to vector<8x128xbf16>
    %c0_32 = arith.constant 0 : index
    %c896 = arith.constant 896 : index
    %82 = vector.load %arg9[%c0_32, %c896] : memref<8x1536xbf16, #tpu.memory_space<vmem>>, vector<8x128xbf16>
    tpu.vector_store %arg9[%c0_32, %c896], %81 {strides = array<i32>} : memref<8x1536xbf16, #tpu.memory_space<vmem>>, vector<8x128xbf16>,
    %83 = vector.extract_strided_slice %0 {offsets = [0, 8], sizes = [8, 1], strides = [1, 1]} : vector<8x12xi32> to vector<8x1xi32>
    %84 = vector.broadcast %83 : vector<8x1xi32> to vector<8x128xi32>
    %85 = arith.cmpi eq, %84, %2 : vector<8x128xi32>
    %86 = arith.extui %85 : vector<8x128xi1> to vector<8x128xi32>
    %87 = arith.sitofp %86 : vector<8x128xi32> to vector<8x128xf32>
    %88 = arith.truncf %87 : vector<8x128xf32> to vector<8x128xbf16>
    %c0_33 = arith.constant 0 : index
    %c0_34 = arith.constant 0 : index
    %89 = vector.load %arg3[%c0_33, %c0_34] : memref<128x128xbf16, #tpu.memory_space<vmem>>, vector<128x128xbf16>
    %cst_35 = arith.constant dense<0.000000e+00> : vector<8x128xf32>
    %90 = tpu.matmul %88, %89, %cst_35 {dimension_numbers = #tpu.dot_dimension_numbers<[1], [0], [0], [1], [0, 0, 1, 1], [], []>} : vector<8x128xbf16>, vector<128x128xbf16>, vector<8x128xf32> -> vector<8x128xf32>
    %91 = arith.truncf %90 : vector<8x128xf32> to vector<8x128xbf16>
    %c0_36 = arith.constant 0 : index
    %c1024 = arith.constant 1024 : index
    %92 = vector.load %arg9[%c0_36, %c1024] : memref<8x1536xbf16, #tpu.memory_space<vmem>>, vector<8x128xbf16>
    tpu.vector_store %arg9[%c0_36, %c1024], %91 {strides = array<i32>} : memref<8x1536xbf16, #tpu.memory_space<vmem>>, vector<8x128xbf16>,
    %93 = vector.extract_strided_slice %0 {offsets = [0, 9], sizes = [8, 1], strides = [1, 1]} : vector<8x12xi32> to vector<8x1xi32>
    %94 = vector.broadcast %93 : vector<8x1xi32> to vector<8x128xi32>
    %95 = arith.cmpi eq, %94, %2 : vector<8x128xi32>
    %96 = arith.extui %95 : vector<8x128xi1> to vector<8x128xi32>
    %97 = arith.sitofp %96 : vector<8x128xi32> to vector<8x128xf32>
    %98 = arith.truncf %97 : vector<8x128xf32> to vector<8x128xbf16>
    %c0_37 = arith.constant 0 : index
    %c0_38 = arith.constant 0 : index
    %99 = vector.load %arg3[%c0_37, %c0_38] : memref<128x128xbf16, #tpu.memory_space<vmem>>, vector<128x128xbf16>
    %cst_39 = arith.constant dense<0.000000e+00> : vector<8x128xf32>
    %100 = tpu.matmul %98, %99, %cst_39 {dimension_numbers = #tpu.dot_dimension_numbers<[1], [0], [0], [1], [0, 0, 1, 1], [], []>} : vector<8x128xbf16>, vector<128x128xbf16>, vector<8x128xf32> -> vector<8x128xf32>
    %101 = arith.truncf %100 : vector<8x128xf32> to vector<8x128xbf16>
    %c0_40 = arith.constant 0 : index
    %c1152 = arith.constant 1152 : index
    %102 = vector.load %arg9[%c0_40, %c1152] : memref<8x1536xbf16, #tpu.memory_space<vmem>>, vector<8x128xbf16>
    tpu.vector_store %arg9[%c0_40, %c1152], %101 {strides = array<i32>} : memref<8x1536xbf16, #tpu.memory_space<vmem>>, vector<8x128xbf16>,
    %103 = vector.extract_strided_slice %0 {offsets = [0, 10], sizes = [8, 1], strides = [1, 1]} : vector<8x12xi32> to vector<8x1xi32>
    %104 = vector.broadcast %103 : vector<8x1xi32> to vector<8x128xi32>
    %105 = arith.cmpi eq, %104, %2 : vector<8x128xi32>
    %106 = arith.extui %105 : vector<8x128xi1> to vector<8x128xi32>
    %107 = arith.sitofp %106 : vector<8x128xi32> to vector<8x128xf32>
    %108 = arith.truncf %107 : vector<8x128xf32> to vector<8x128xbf16>
    %c0_41 = arith.constant 0 : index
    %c0_42 = arith.constant 0 : index
    %109 = vector.load %arg3[%c0_41, %c0_42] : memref<128x128xbf16, #tpu.memory_space<vmem>>, vector<128x128xbf16>
    %cst_43 = arith.constant dense<0.000000e+00> : vector<8x128xf32>
    %110 = tpu.matmul %108, %109, %cst_43 {dimension_numbers = #tpu.dot_dimension_numbers<[1], [0], [0], [1], [0, 0, 1, 1], [], []>} : vector<8x128xbf16>, vector<128x128xbf16>, vector<8x128xf32> -> vector<8x128xf32>
    %111 = arith.truncf %110 : vector<8x128xf32> to vector<8x128xbf16>
    %c0_44 = arith.constant 0 : index
    %c1280 = arith.constant 1280 : index
    %112 = vector.load %arg9[%c0_44, %c1280] : memref<8x1536xbf16, #tpu.memory_space<vmem>>, vector<8x128xbf16>
    tpu.vector_store %arg9[%c0_44, %c1280], %111 {strides = array<i32>} : memref<8x1536xbf16, #tpu.memory_space<vmem>>, vector<8x128xbf16>,
    %113 = vector.extract_strided_slice %0 {offsets = [0, 11], sizes = [8, 1], strides = [1, 1]} : vector<8x12xi32> to vector<8x1xi32>
    %114 = vector.broadcast %113 : vector<8x1xi32> to vector<8x128xi32>
    %115 = arith.cmpi eq, %114, %2 : vector<8x128xi32>
    %116 = arith.extui %115 : vector<8x128xi1> to vector<8x128xi32>
    %117 = arith.sitofp %116 : vector<8x128xi32> to vector<8x128xf32>
    %118 = arith.truncf %117 : vector<8x128xf32> to vector<8x128xbf16>
    %c0_45 = arith.constant 0 : index
    %c0_46 = arith.constant 0 : index
    %119 = vector.load %arg3[%c0_45, %c0_46] : memref<128x128xbf16, #tpu.memory_space<vmem>>, vector<128x128xbf16>
    %cst_47 = arith.constant dense<0.000000e+00> : vector<8x128xf32>
    %120 = tpu.matmul %118, %119, %cst_47 {dimension_numbers = #tpu.dot_dimension_numbers<[1], [0], [0], [1], [0, 0, 1, 1], [], []>} : vector<8x128xbf16>, vector<128x128xbf16>, vector<8x128xf32> -> vector<8x128xf32>
    %121 = arith.truncf %120 : vector<8x128xf32> to vector<8x128xbf16>
    %c0_48 = arith.constant 0 : index
    %c1408 = arith.constant 1408 : index
    %122 = vector.load %arg9[%c0_48, %c1408] : memref<8x1536xbf16, #tpu.memory_space<vmem>>, vector<8x128xbf16>
    tpu.vector_store %arg9[%c0_48, %c1408], %121 {strides = array<i32>} : memref<8x1536xbf16, #tpu.memory_space<vmem>>, vector<8x128xbf16>,
    %c0_49 = arith.constant 0 : index
    %c0_50 = arith.constant 0 : index
    %123 = vector.load %arg9[%c0_49, %c0_50] : memref<8x1536xbf16, #tpu.memory_space<vmem>>, vector<8x1536xbf16>
    %c0_51 = arith.constant 0 : index
    %c0_52 = arith.constant 0 : index
    %124 = vector.load %arg4[%c0_51, %c0_52] : memref<1536x512xbf16, #tpu.memory_space<vmem>>, vector<1536x512xbf16>
    %cst_53 = arith.constant dense<0.000000e+00> : vector<8x512xf32>
    %125 = tpu.matmul %123, %124, %cst_53 {dimension_numbers = #tpu.dot_dimension_numbers<[1], [0], [0], [1], [0, 0, 1, 1], [], []>} : vector<8x1536xbf16>, vector<1536x512xbf16>, vector<8x512xf32> -> vector<8x512xf32>
    %c0_54 = arith.constant 0 : index
    %c0_55 = arith.constant 0 : index
    %126 = vector.load %arg5[%c0_54, %c0_55] : memref<1x512xf32, #tpu.memory_space<vmem>>, vector<1x512xf32>
    %127 = vector.broadcast %126 : vector<1x512xf32> to vector<8x512xf32>
    %128 = arith.addf %125, %127 : vector<8x512xf32>
    %cst_56 = arith.constant 0.000000e+00 : f32
    %129 = vector.broadcast %cst_56 : f32 to vector<8x512xf32>
    %130 = arith.maximumf %128, %129 : vector<8x512xf32>
    %131 = arith.truncf %130 : vector<8x512xf32> to vector<8x512xbf16>
    %c0_57 = arith.constant 0 : index
    %c0_58 = arith.constant 0 : index
    %132 = vector.load %arg6[%c0_57, %c0_58] : memref<512x128xbf16, #tpu.memory_space<vmem>>, vector<512x128xbf16>
    %cst_59 = arith.constant dense<0.000000e+00> : vector<8x128xf32>
    %133 = tpu.matmul %131, %132, %cst_59 {dimension_numbers = #tpu.dot_dimension_numbers<[1], [0], [0], [1], [0, 0, 1, 1], [], []>} : vector<8x512xbf16>, vector<512x128xbf16>, vector<8x128xf32> -> vector<8x128xf32>
    %c0_60 = arith.constant 0 : index
    %c0_61 = arith.constant 0 : index
    %134 = vector.load %arg7[%c0_60, %c0_61] : memref<1x128xf32, #tpu.memory_space<vmem>>, vector<1x128xf32>
    %135 = vector.broadcast %134 : vector<1x128xf32> to vector<8x128xf32>
    %136 = arith.addf %133, %135 : vector<8x128xf32>
    %cst_62 = arith.constant dense<0xFF800000> : vector<8xf32>
    %137 = vector.multi_reduction <maximumf>, %136, %cst_62 [1] : vector<8x128xf32> to vector<8xf32>
    %138 = vector.shape_cast %137 : vector<8xf32> to vector<8x1xf32>
    %139 = vector.broadcast %138 : vector<8x1xf32> to vector<8x128xf32>
    %140 = arith.subf %136, %139 : vector<8x128xf32>
    %141 = math.exp %140 : vector<8x128xf32>
    %cst_63 = arith.constant dense<0.000000e+00> : vector<8xf32>
    %142 = vector.multi_reduction <add>, %141, %cst_63 [1] : vector<8x128xf32> to vector<8xf32>
    %143 = vector.shape_cast %142 : vector<8xf32> to vector<8x1xf32>
    %144 = math.log %143 : vector<8x1xf32>
    %145 = vector.broadcast %144 : vector<8x1xf32> to vector<8x128xf32>
    %146 = arith.subf %140, %145 : vector<8x128xf32>
    %c0_64 = arith.constant 0 : index
    %c0_65 = arith.constant 0 : index
    %147 = vector.load %arg8[%c0_64, %c0_65] : memref<8x128xf32, #tpu.memory_space<vmem>>, vector<8x128xf32>
    tpu.vector_store %arg8[%c0_64, %c0_65], %146 {strides = array<i32>} : memref<8x128xf32, #tpu.memory_space<vmem>>, vector<8x128xf32>,
    return
  }
  func.func @transform_0(%arg0: i32) -> (i32, i32) {
    %c0_i32 = arith.constant 0 : i32
    %c0_i32_0 = arith.constant 0 : i32
    return %arg0, %c0_i32 : i32, i32
  }
  func.func @transform_1(%arg0: i32) -> (i32, i32) {
    %c0_i32 = arith.constant 0 : i32
    %c0_i32_0 = arith.constant 0 : i32
    %c0_i32_1 = arith.constant 0 : i32
    return %c0_i32, %c0_i32_0 : i32, i32
  }
  func.func @transform_2(%arg0: i32) -> (i32, i32) {
    %c0_i32 = arith.constant 0 : i32
    %c0_i32_0 = arith.constant 0 : i32
    %c0_i32_1 = arith.constant 0 : i32
    return %c0_i32, %c0_i32_0 : i32, i32
  }
  func.func @transform_3(%arg0: i32) -> (i32, i32) {
    %c0_i32 = arith.constant 0 : i32
    %c0_i32_0 = arith.constant 0 : i32
    %c0_i32_1 = arith.constant 0 : i32
    return %c0_i32, %c0_i32_0 : i32, i32
  }
  func.func @transform_4(%arg0: i32) -> (i32, i32) {
    %c0_i32 = arith.constant 0 : i32
    %c0_i32_0 = arith.constant 0 : i32
    %c0_i32_1 = arith.constant 0 : i32
    return %c0_i32, %c0_i32_0 : i32, i32
  }
  func.func @transform_5(%arg0: i32) -> (i32, i32) {
    %c0_i32 = arith.constant 0 : i32
    %c0_i32_0 = arith.constant 0 : i32
    %c0_i32_1 = arith.constant 0 : i32
    return %c0_i32, %c0_i32_0 : i32, i32
  }
  func.func @transform_6(%arg0: i32) -> (i32, i32) {
    %c0_i32 = arith.constant 0 : i32
    %c0_i32_0 = arith.constant 0 : i32
    %c0_i32_1 = arith.constant 0 : i32
    return %c0_i32, %c0_i32_0 : i32, i32
  }
  func.func @transform_7(%arg0: i32) -> (i32, i32) {
    %c0_i32 = arith.constant 0 : i32
    %c0_i32_0 = arith.constant 0 : i32
    return %arg0, %c0_i32 : i32, i32
  }
}

</mosaic_0001>

<bundles_post_ra>
// kernel: word_pos_forward.1
= control target key start
LH: loop header
LB: loop body
LE: loop exit
PB: predicated region body
PF: predicated region fallthrough
CT: control target
= control target key end

     0   :  { %v6352_v2 = vmov 0   ;;  %v6353_v3 = vmov 2   ;;  %v6354_v4 = vmov 0.0   ;;  %v6355_v7 = vmov 1   ;;  %s8193_s0 = inlined_call_operand.vmem [shape: s32[8,12], index: 0, kind: input, shape index: {}]   ;;  %s8194_s1 = inlined_call_operand.vmem [shape: bf16[128,128], index: 1, kind: input, shape index: {}]   ;;  %s8195_s2 = inlined_call_operand.vmem [shape: bf16[128,128], index: 2, kind: input, shape index: {}]   ;;  %s8196_s3 = inlined_call_operand.vmem [shape: bf16[1536,512], index: 3, kind: input, shape index: {}]   ;;  %s8197_s4 = inlined_call_operand.vmem [shape: f32[1,512], index: 4, kind: input, shape index: {}]   ;;  %s8198_s5 = inlined_call_operand.vmem [shape: bf16[512,128], index: 5, kind: input, shape index: {}]   ;;  %s8199_s6 = inlined_call_operand.vmem [shape: f32[1,128], index: 6, kind: input, shape index: {}]   ;;  %s8200_s7 = inlined_call_operand.hbm [shape: f32[8,128], index: 7, kind: output, shape index: {}]  }
   0x1   :  { %v6411_v0 = vld [vmem:[%s8193_s0] sm:$0xff]  ;;  %v5610_v1 = vld [vmem:[%s8194_s1 + $0x38] sm:$0xff]   ;;  %5598 = vset.pattern.permute.xlu0 %v6352_v2  ;;  %5600 = vset.pattern.permute.xlu1 %v6353_v3  ;;  %v5611_v5 = vld [vmem:[%s8194_s1 + $0x30] sm:$0xff]   ;;  %v6356_v8 = vmov 3   ;;  %vm6357_vm0 = vmmov 0   ;;  %v6358_v11 = vmov 4   ;;  %v29_v30 = vlaneseq }
   0x2   :  { %32 = vperm.xlu0 %5598, %v6411_v0   ;;  %258 = vperm.xlu1 %5600, %v6411_v0   ;;  %v5612_v6 = vld [vmem:[%s8194_s1 + $0x38] sm:$0xff]   ;;  %v5613_v9 = vld [vmem:[%s8194_s1 + $0x28] sm:$0xff]   ;;  %v5614_v10 = vld [vmem:[%s8194_s1 + $0x30] sm:$0xff]   ;;  %v6359_v12 = vmov 5   ;;  %v6360_v15 = vmov 6   ;;  %v6361_v17 = vmov 8  }
   0x3   :  { %5342 = vmatprep.subr.bf16.mxu0 %v6354_v4  ;;  %5362 = vmatprep.subr.bf16.mxu1 %v6354_v4  ;;  %v5615_v13 = vld [vmem:[%s8194_s1 + $0x20] sm:$0xff]   ;;  %v5616_v14 = vld [vmem:[%s8194_s1 + $0x28] sm:$0xff]   ;;  %v5617_v16 = vld [vmem:[%s8194_s1 + $0x18] sm:$0xff]   ;;  %v6362_v19 = vmov 7   ;;  %v6363_v24 = vmov 9   ;;  %v6364_v27 = vmov 10  }
   0x4   :  { %5343 = vmatpush3.bf16.msra.mxu0 %v5610_v1  ;;  %5363 = vmatpush3.bf16.msra.mxu1 %v5612_v6  ;;  %v5618_v18 = vld [vmem:[%s8194_s1 + $0x20] sm:$0xff]   ;;  %v5619_v20 = vld [vmem:[%s8194_s1 + $0x10] sm:$0xff]   ;;  %v5620_v21 = vld [vmem:[%s8194_s1 + $0x18] sm:$0xff]   ;;  %v6365_v29 = vmov 11   ;;  %v6496_v31 = vand.u32 127, %v29_v30 }
   0x5   :  { %5344 = vmatprep.subr.bf16.mxu0 %v6354_v4  ;;  %5364 = vmatprep.subr.bf16.mxu1 %v6354_v4  ;;  %v5621_v22 = vld [vmem:[%s8194_s1 + $0x8] sm:$0xff]   ;;  %v5622_v23 = vld [vmem:[%s8194_s1 + $0x10] sm:$0xff]   ;;  %v5623_v25 = vld [vmem:[%s8194_s1] sm:$0xff]   ;;  %v6366_v34 = vmov 1.0|1.0  }
   0x6   :  { %5599 = vset.pattern.permute.xlu0 %v6355_v7  ;;  %5601 = vset.pattern.permute.xlu1 %v6356_v8  ;;  %v5624_v26 = vld [vmem:[%s8194_s1 + $0x8] sm:$0xff]   ;;  %v5626_v28 = vld [vmem:[%s8194_s1] sm:$0xff]   ;;  %v5625_v32 = vld [vmem:[%s8194_s1 + $0x38] sm:$0xff]  }
   0x7   :  { %145 = vperm.xlu0 %5599, %v6411_v0   ;;  %371 = vperm.xlu1 %5601, %v6411_v0   ;;  %v5627_v35 = vld [vmem:[%s8194_s1 + $0x30] sm:$0xff]   ;;  %v5628_v36 = vld [vmem:[%s8194_s1 + $0x38] sm:$0xff]   ;;  %v5629_v38 = vld [vmem:[%s8194_s1 + $0x28] sm:$0xff]  }
   0x8   :  { %5345 = vmatpush3.bf16.msra.mxu0 %v5611_v5  ;;  %5358 = vmatprep.mubr.msk.bf16.mxu0 %vm6357_vm0, %v6354_v4  ;;  %v5630_v39 = vld [vmem:[%s8194_s1 + $0x30] sm:$0xff]   ;;  %v5631_v40 = vld [vmem:[%s8194_s1 + $0x20] sm:$0xff]   ;;  %v5632_v41 = vld [vmem:[%s8194_s1 + $0x28] sm:$0xff]  }
   0x9   :  { %5346 = vmatprep.subr.bf16.mxu0 %v6354_v4  ;;  %5378 = vmatprep.mubr.msk.bf16.mxu1 %vm6357_vm0, %v6354_v4  ;;  %v5633_v42 = vld [vmem:[%s8194_s1 + $0x18] sm:$0xff]   ;;  %v5634_v43 = vld [vmem:[%s8194_s1 + $0x20] sm:$0xff]   ;;  %v5635_v44 = vld [vmem:[%s8194_s1 + $0x10] sm:$0xff]  }
   0xa   :  { %5365 = vmatpush3.bf16.msra.mxu1 %v5614_v10  ;;  %v5636_v45 = vld [vmem:[%s8194_s1 + $0x18] sm:$0xff]   ;;  %v5637_v46 = vld [vmem:[%s8194_s1 + $0x8] sm:$0xff]   ;;  %v5638_v47 = vld [vmem:[%s8194_s1 + $0x10] sm:$0xff]  }
   0xb   :  { %5602 = vset.pattern.permute.xlu1 %v6358_v11  ;;  %5603 = vset.pattern.permute.xlu0 %v6359_v12  ;;  %v5639_v49 = vld [vmem:[%s8194_s1] sm:$0xff]   ;;  %v5640_v50 = vld [vmem:[%s8194_s1 + $0x8] sm:$0xff]   ;;  %v5641_v51 = vld [vmem:[%s8194_s1 + $0x38] sm:$0xff]  }
   0xc   :  { %484 = vperm.xlu1 %5602, %v6411_v0   ;;  %597 = vperm.xlu0 %5603, %v6411_v0   ;;  %v5642_v53 = vld [vmem:[%s8194_s1] sm:$0xff]   ;;  %v5643_v54 = vld [vmem:[%s8194_s1 + $0x30] sm:$0xff]   ;;  %v5644_v55 = vld [vmem:[%s8194_s1 + $0x38] sm:$0xff]  }
   0xd   :  { %5347 = vmatpush3.bf16.msra.mxu0 %v5613_v9  ;;  %5366 = vmatprep.subr.bf16.mxu1 %v6354_v4  ;;  %v5645_v56 = vld [vmem:[%s8194_s1 + $0x28] sm:$0xff]   ;;  %v5646_v57 = vld [vmem:[%s8194_s1 + $0x30] sm:$0xff]   ;;  %v5647_v58 = vld [vmem:[%s8194_s1 + $0x20] sm:$0xff]  }
   0xe   :  { %5348 = vmatprep.subr.bf16.mxu0 %v6354_v4  ;;  %5367 = vmatpush3.bf16.msra.mxu1 %v5616_v14  ;;  %v5648_v59 = vld [vmem:[%s8194_s1 + $0x28] sm:$0xff]   ;;  %v5649_v60 = vld [vmem:[%s8194_s1 + $0x18] sm:$0xff]   ;;  %v5650_v61 = vld [vmem:[%s8194_s1 + $0x20] sm:$0xff]  }
   0xf   :  { %5368 = vmatprep.subr.bf16.mxu1 %v6354_v4  ;;  %v5651_v62 = vld [vmem:[%s8194_s1 + $0x10] sm:$0xff]   ;;  %v5652_v63 = vld [vmem:[%s8194_s1 + $0x18] sm:$0xff]   ;;  %v5655_v3 = vld [vmem:[%s8194_s1] sm:$0xff]  }
  0x10   :  { %5604 = vset.pattern.permute.xlu1 %v6360_v15  ;;  %5606 = vset.pattern.permute.xlu0 %v6361_v17  ;;  %v5654_v1 = vld [vmem:[%s8194_s1 + $0x10] sm:$0xff]   ;;  %v5656_v5 = vld [vmem:[%s8194_s1 + $0x8] sm:$0xff]   ;;  %v5657_v7 = vld [vmem:[%s8195_s2 + $0x38] sm:$0xff]  }
  0x11   :  { %710 = vperm.xlu1 %5604, %v6411_v0   ;;  %5349 = vmatpush3.bf16.msra.mxu0 %v5615_v13  ;;  %v5658_v8 = vld [vmem:[%s8194_s1] sm:$0xff]   ;;  %v5659_v9 = vld [vmem:[%s8195_s2 + $0x30] sm:$0xff]   ;;  %v5660_v10 = vld [vmem:[%s8195_s2 + $0x38] sm:$0xff]  }
  0x12   :  { %5350 = vmatprep.subr.bf16.mxu0 %v6354_v4  ;;  %936 = vperm.xlu0 %5606, %v6411_v0   ;;  %v5661_v11 = vld [vmem:[%s8195_s2 + $0x28] sm:$0xff]   ;;  %v5662_v12 = vld [vmem:[%s8195_s2 + $0x30] sm:$0xff]   ;;  %v5663_v13 = vld [vmem:[%s8195_s2 + $0x20] sm:$0xff]  }
  0x13   :  { %5369 = vmatpush3.bf16.msra.mxu1 %v5618_v18  ;;  %v5664_v14 = vld [vmem:[%s8195_s2 + $0x28] sm:$0xff]   ;;  %v5665_v15 = vld [vmem:[%s8195_s2 + $0x18] sm:$0xff]   ;;  %v5667_v17 = vld [vmem:[%s8195_s2 + $0x10] sm:$0xff]  }
  0x14   :  { %5370 = vmatprep.subr.bf16.mxu1 %v6354_v4  ;;  %v5668_v18 = vld [vmem:[%s8195_s2 + $0x18] sm:$0xff]  }
  0x15   :  { %5605 = vset.pattern.permute.xlu1 %v6362_v19  ;;  %5351 = vmatpush3.bf16.msra.mxu0 %v5617_v16  ;;  %v5666_v16 = vld [vmem:[%s8195_s2 + $0x20] sm:$0xff]   ;;  %v5669_v19 = vld [vmem:[%s8195_s2 + $0x8] sm:$0xff]  }
  0x16   :  { %823 = vperm.xlu1 %5605, %v6411_v0   ;;  %5352 = vmatprep.subr.bf16.mxu0 %v6354_v4 }
  0x17   :  { %5371 = vmatpush3.bf16.msra.mxu1 %v5620_v21  ;;  %5609 = vset.pattern.permute.xlu0 %v6365_v29  ;;  %v5677_v29 = vld [vmem:[%s8195_s2 + $0x28] sm:$0xff]  }
  0x18   :  { %5372 = vmatprep.subr.bf16.mxu1 %v6354_v4  ;;  %1275 = vperm.xlu0 %5609, %v6411_v0  }
  0x19   :  { %5353 = vmatpush3.bf16.msra.mxu0 %v5619_v20  ;;  %v5670_v20 = vld [vmem:[%s8195_s2 + $0x10] sm:$0xff]  }
  0x1a   :  { %5354 = vmatprep.subr.bf16.mxu0 %v6354_v4  ;;  %5607 = vset.pattern.permute.xlu1 %v6363_v24  ;;  %v5673_v24 = vld [vmem:[%s8195_s2 + $0x38] sm:$0xff]  }
  0x1b   :  { %1049 = vperm.xlu1 %5607, %v6411_v0   ;;  %5373 = vmatpush3.bf16.msra.mxu1 %v5622_v23  ;;  %v5672_v23 = vld [vmem:[%s8195_s2 + $0x8] sm:$0xff]  }
  0x1c   :  { %5374 = vmatprep.subr.bf16.mxu1 %v6354_v4 }
  0x1d   :  { %5355 = vmatpush3.bf16.msra.mxu0 %v5621_v22  ;;  %v5671_v22 = vld [vmem:[%s8195_s2] sm:$0xff]  }
  0x1e   :  { %5356 = vmatprep.subr.bf16.mxu0 %v6354_v4 }
  0x1f   :  { %5608 = vset.pattern.permute.xlu1 %v6364_v27  ;;  %5375 = vmatpush3.bf16.msra.mxu1 %v5624_v26  ;;  %v5674_v26 = vld [vmem:[%s8195_s2] sm:$0xff]   ;;  %v5675_v27 = vld [vmem:[%s8195_s2 + $0x30] sm:$0xff]  }
  0x20   :  { %5376 = vmatprep.subr.bf16.mxu1 %v6354_v4  ;;  %1162 = vperm.xlu1 %5608, %v6411_v0   ;;  %v5653_v0 = vld [vmem:[%s8194_s1 + $0x8] sm:$0xff]  }
  0x21   :  { %5357 = vmatpush3.bf16.msra.mxu0 %v5623_v25 }
  0x22   :  { %5382 = vmatprep.subr.bf16.mxu0 %v6354_v4 }
  0x23   :  { %5377 = vmatpush3.bf16.msra.mxu1 %v5626_v28  ;;  %v5676_v28 = vld [vmem:[%s8195_s2 + $0x38] sm:$0xff]  }
  0x24   :  { %5402 = vmatprep.subr.bf16.mxu1 %v6354_v4 }
  0x7d   :  { %v33_v33 = vpop.permute.xlu0 %32  ;;  %v259_v48 = vpop.permute.xlu1 %258 }
  0x7e   :  { %vm34_vm1 = vcmp.eq.s32.totalorder %v33_v33, %v6496_v31  ;;  %vm260_vm5 = vcmp.eq.s32.totalorder %v259_v48, %v6496_v31  ;;  %v5679_v33 = vld [vmem:[%s8195_s2 + $0x20] sm:$0xff]   ;;  %v5691_v48 = vld [vmem:[%s8195_s2 + $0x30] sm:$0xff]  }
  0x7f   :  { %vm4638_vm2 = vmpackc.low %vm34_vm1, %vm34_vm1 }
  0x80   :  { %5359 = vmatmul.mubr.msk.bf16.vlgmr.msra.gmra.mxu0 %vm4638_vm2, %v6366_v34  ;;  %vm4660_vm6 = vmpackc.low %vm260_vm5, %vm260_vm5 }
  0x81   :  { %5383 = vmatpush3.bf16.msra.mxu0 %v5625_v32  ;;  %5398 = vmatprep.mubr.msk.bf16.mxu0 %vm6357_vm0, %v6354_v4  ;;  %v5678_v32 = vld [vmem:[%s8195_s2 + $0x30] sm:$0xff]  }
  0x82   :  { %v146_v37 = vpop.permute.xlu0 %145  ;;  %5384 = vmatprep.subr.bf16.mxu0 %v6354_v4  ;;  %v372_v52 = vpop.permute.xlu1 %371 }
  0x83   :  { %vm147_vm3 = vcmp.eq.s32.totalorder %v146_v37, %v6496_v31  ;;  %vm373_vm7 = vcmp.eq.s32.totalorder %v372_v52, %v6496_v31  ;;  %v5682_v37 = vld [vmem:[%s8195_s2 + $0x20] sm:$0xff]  }
  0x84   :  { %vm4649_vm4 = vmpackc.low %vm147_vm3, %vm147_vm3  ;;  %v5695_v52 = vld [vmem:[%s8195_s2 + $0x20] sm:$0xff]  }
  0x85   :  { %5385 = vmatpush3.bf16.msra.mxu0 %v5627_v35  ;;  %5379 = vmatmul.mubr.msk.bf16.vlgmr.msra.gmra.mxu1 %vm4649_vm4, %v6366_v34  ;;  %vm4671_vm8 = vmpackc.low %vm373_vm7, %vm373_vm7  ;;  %v5680_v35 = vld [vmem:[%s8195_s2 + $0x28] sm:$0xff]  }
  0x86   :  { %5403 = vmatpush3.bf16.msra.mxu1 %v5628_v36  ;;  %5386 = vmatprep.subr.bf16.mxu0 %v6354_v4  ;;  %v5681_v36 = vld [vmem:[%s8195_s2 + $0x18] sm:$0xff]  }
  0x87   :  { %5404 = vmatprep.subr.bf16.mxu1 %v6354_v4  ;;  %5418 = vmatprep.mubr.msk.bf16.mxu1 %vm6357_vm0, %v6354_v4  ;;  %v485_v2 = vpop.permute.xlu1 %484  ;;  %v598_v6 = vpop.permute.xlu0 %597 }
  0x88   :  { %vm486_vm9 = vcmp.eq.s32.totalorder %v485_v2, %v6496_v31  ;;  %vm599_vm11 = vcmp.eq.s32.totalorder %v598_v6, %v6496_v31  ;;  %v5708_v2 = vld [vmem:[%s8195_s2] sm:$0xff]  }
  0x89   :  { %5387 = vmatpush3.bf16.msra.mxu0 %v5629_v38  ;;  %vm4682_vm10 = vmpackc.low %vm486_vm9, %vm486_vm9  ;;  %v5683_v38 = vld [vmem:[%s8195_s2 + $0x10] sm:$0xff]  }
  0x8a   :  { %5405 = vmatpush3.bf16.msra.mxu1 %v5630_v39  ;;  %5388 = vmatprep.subr.bf16.mxu0 %v6354_v4  ;;  %vm4693_vm12 = vmpackc.low %vm599_vm11, %vm599_vm11  ;;  %v5684_v39 = vld [vmem:[%s8195_s2 + $0x18] sm:$0xff]   ;;  %v5723_v6 = vld [vmem:[%s8196_s3 + $0x2e4] ss:$16 sps:$4 sm:$0xff]  }
  0x8b   :  { %5406 = vmatprep.subr.bf16.mxu1 %v6354_v4 }
  0x8c   :  { %v711_v21 = vpop.permute.xlu1 %710 }
  0x8d   :  { %5389 = vmatpush3.bf16.msra.mxu0 %v5631_v40  ;;  %vm712_vm13 = vcmp.eq.s32.totalorder %v711_v21, %v6496_v31  ;;  %v5685_v40 = vld [vmem:[%s8195_s2 + $0x8] sm:$0xff]  }
  0x8e   :  { %5407 = vmatpush3.bf16.msra.mxu1 %v5632_v41  ;;  %5390 = vmatprep.subr.bf16.mxu0 %v6354_v4  ;;  %vm4704_vm14 = vmpackc.low %vm712_vm13, %vm712_vm13  ;;  %v5686_v41 = vld [vmem:[%s8195_s2 + $0x10] sm:$0xff]  }
  0x8f   :  { %5408 = vmatprep.subr.bf16.mxu1 %v6354_v4 }
  0x91   :  { %5391 = vmatpush3.bf16.msra.mxu0 %v5633_v42  ;;  %v824_v25 = vpop.permute.xlu1 %823  ;;  %v937_v42 = vpop.permute.xlu0 %936 }
  0x92   :  { %5409 = vmatpush3.bf16.msra.mxu1 %v5634_v43  ;;  %5392 = vmatprep.subr.bf16.mxu0 %v6354_v4  ;;  %vm825_vm15 = vcmp.eq.s32.totalorder %v824_v25, %v6496_v31  ;;  %v5687_v43 = vld [vmem:[%s8195_s2] sm:$0xff]   ;;  %vm938_vm2 = vcmp.eq.s32.totalorder %v937_v42, %v6496_v31 }
  0x93   :  { %5410 = vmatprep.subr.bf16.mxu1 %v6354_v4  ;;  %vm4715_vm1 = vmpackc.low %vm825_vm15, %vm825_vm15 }
  0x94   :  { %vm4726_vm3 = vmpackc.low %vm938_vm2, %vm938_vm2 }
  0x95   :  { %5393 = vmatpush3.bf16.msra.mxu0 %v5635_v44  ;;  %v5688_v44 = vld [vmem:[%s8195_s2 + $0x8] sm:$0xff]  }
  0x96   :  { %5411 = vmatpush3.bf16.msra.mxu1 %v5636_v45  ;;  %5394 = vmatprep.subr.bf16.mxu0 %v6354_v4  ;;  %v5689_v45 = vld [vmem:[%s8195_s2 + $0x38] sm:$0xff]  }
  0x97   :  { %5412 = vmatprep.subr.bf16.mxu1 %v6354_v4 }
  0x99   :  { %5395 = vmatpush3.bf16.msra.mxu0 %v5637_v46  ;;  %v1050_v46 = vpop.permute.xlu1 %1049 }
  0x9a   :  { %5413 = vmatpush3.bf16.msra.mxu1 %v5638_v47  ;;  %5396 = vmatprep.subr.bf16.mxu0 %v6354_v4  ;;  %v5690_v47 = vld [vmem:[%s8195_s2] sm:$0xff]   ;;  %vm1051_vm4 = vcmp.eq.s32.totalorder %v1050_v46, %v6496_v31 }
  0x9b   :  { %5414 = vmatprep.subr.bf16.mxu1 %v6354_v4  ;;  %vm4737_vm5 = vmpackc.low %vm1051_vm4, %vm1051_vm4 }
  0x9d   :  { %5397 = vmatpush3.bf16.msra.mxu0 %v5639_v49  ;;  %v5692_v49 = vld [vmem:[%s8195_s2 + $0x38] sm:$0xff]  }
  0x9e   :  { %5415 = vmatpush3.bf16.msra.mxu1 %v5640_v50  ;;  %5422 = vmatprep.subr.bf16.mxu0 %v6354_v4  ;;  %v5693_v50 = vld [vmem:[%s8195_s2 + $0x28] sm:$0xff]  }
  0x9f   :  { %5416 = vmatprep.subr.bf16.mxu1 %v6354_v4 }
  0xa0   :  { %5399 = vmatmul.mubr.msk.bf16.vlgmr.msra.gmra.mxu0 %vm4660_vm6, %v6366_v34 }
  0xa1   :  { %5423 = vmatpush3.bf16.msra.mxu0 %v5641_v51  ;;  %5438 = vmatprep.mubr.msk.bf16.mxu0 %vm6357_vm0, %v6354_v4  ;;  %v5694_v51 = vld [vmem:[%s8195_s2 + $0x30] sm:$0xff]  }
  0xa2   :  { %5417 = vmatpush3.bf16.msra.mxu1 %v5642_v53  ;;  %5424 = vmatprep.subr.bf16.mxu0 %v6354_v4  ;;  %v5696_v53 = vld [vmem:[%s8195_s2 + $0x28] sm:$0xff]  }
  0xa3   :  { %5442 = vmatprep.subr.bf16.mxu1 %v6354_v4 }
  0xa5   :  { %5419 = vmatmul.mubr.msk.bf16.vlgmr.msra.gmra.mxu1 %vm4671_vm8, %v6366_v34  ;;  %5425 = vmatpush3.bf16.msra.mxu0 %v5643_v54  ;;  %v5697_v54 = vld [vmem:[%s8195_s2 + $0x18] sm:$0xff]  }
  0xa6   :  { %5443 = vmatpush3.bf16.msra.mxu1 %v5644_v55  ;;  %5426 = vmatprep.subr.bf16.mxu0 %v6354_v4  ;;  %v5698_v55 = vld [vmem:[%s8195_s2 + $0x20] sm:$0xff]  }
  0xa7   :  { %5444 = vmatprep.subr.bf16.mxu1 %v6354_v4  ;;  %5458 = vmatprep.mubr.msk.bf16.mxu1 %vm6357_vm0, %v6354_v4 }
  0xa9   :  { %5427 = vmatpush3.bf16.msra.mxu0 %v5645_v56  ;;  %v5699_v56 = vld [vmem:[%s8195_s2 + $0x10] sm:$0xff]  }
  0xaa   :  { %5445 = vmatpush3.bf16.msra.mxu1 %v5646_v57  ;;  %5428 = vmatprep.subr.bf16.mxu0 %v6354_v4  ;;  %v5700_v57 = vld [vmem:[%s8195_s2 + $0x18] sm:$0xff]  }
  0xab   :  { %5446 = vmatprep.subr.bf16.mxu1 %v6354_v4 }
  0xad   :  { %5429 = vmatpush3.bf16.msra.mxu0 %v5647_v58  ;;  %v5701_v58 = vld [vmem:[%s8195_s2 + $0x8] sm:$0xff]  }
  0xae   :  { %5447 = vmatpush3.bf16.msra.mxu1 %v5648_v59  ;;  %5430 = vmatprep.subr.bf16.mxu0 %v6354_v4  ;;  %v5702_v59 = vld [vmem:[%s8195_s2 + $0x10] sm:$0xff]  }
  0xaf   :  { %5448 = vmatprep.subr.bf16.mxu1 %v6354_v4 }
  0xb1   :  { %5431 = vmatpush3.bf16.msra.mxu0 %v5649_v60  ;;  %v1163_v60 = vpop.permute.xlu1 %1162 }
  0xb2   :  { %5449 = vmatpush3.bf16.msra.mxu1 %v5650_v61  ;;  %5432 = vmatprep.subr.bf16.mxu0 %v6354_v4  ;;  %v5703_v61 = vld [vmem:[%s8195_s2] sm:$0xff]  }
  0xb3   :  { %5450 = vmatprep.subr.bf16.mxu1 %v6354_v4 }
  0xb5   :  { %5433 = vmatpush3.bf16.msra.mxu0 %v5651_v62  ;;  %v5704_v62 = vld [vmem:[%s8195_s2 + $0x8] sm:$0xff]  }
  0xb6   :  { %5451 = vmatpush3.bf16.msra.mxu1 %v5652_v63  ;;  %5434 = vmatprep.subr.bf16.mxu0 %v6354_v4  ;;  %v5707_v63 = vld [vmem:[%s8196_s3 + $0xe4] ss:$16 sps:$4 sm:$0xff]  }
  0xb7   :  { %5452 = vmatprep.subr.bf16.mxu1 %v6354_v4 }
  0xb9   :  { %5435 = vmatpush3.bf16.msra.mxu0 %v5653_v0  ;;  %v1276_v0 = vpop.permute.xlu0 %1275 }
  0xba   :  { %5453 = vmatpush3.bf16.msra.mxu1 %v5654_v1  ;;  %5436 = vmatprep.subr.bf16.mxu0 %v6354_v4  ;;  %v5705_v1 = vld [vmem:[%s8196_s3 + $0xe0] ss:$16 sps:$4 sm:$0xff]   ;;  %vm1277_vm7 = vcmp.eq.s32.totalorder %v1276_v0, %v6496_v31 }
  0xbb   :  { %5454 = vmatprep.subr.bf16.mxu1 %v6354_v4  ;;  %vm4759_vm8 = vmpackc.low %vm1277_vm7, %vm1277_vm7 }
  0xbd   :  { %5437 = vmatpush3.bf16.msra.mxu0 %v5655_v3  ;;  %v5711_v3 = vld [vmem:[%s8196_s3 + $0xc4] ss:$16 sps:$4 sm:$0xff]  }
  0xbe   :  { %5455 = vmatpush3.bf16.msra.mxu1 %v5656_v5  ;;  %5462 = vmatprep.subr.bf16.mxu0 %v6354_v4  ;;  %v5709_v5 = vld [vmem:[%s8196_s3 + $0xc0] ss:$16 sps:$4 sm:$0xff]  }
  0xbf   :  { %5456 = vmatprep.subr.bf16.mxu1 %v6354_v4 }
  0xc0   :  { %5439 = vmatmul.mubr.msk.bf16.vlgmr.msra.gmra.mxu0 %vm4682_vm10, %v6366_v34 }
  0xc1   :  { %5463 = vmatpush3.bf16.msra.mxu0 %v5657_v7  ;;  %5478 = vmatprep.mubr.msk.bf16.mxu0 %vm6357_vm0, %v6354_v4  ;;  %v5729_v7 = vld [vmem:[%s8196_s3 + $0x2c4] ss:$16 sps:$4 sm:$0xff]  }
  0xc2   :  { %5457 = vmatpush3.bf16.msra.mxu1 %v5658_v8  ;;  %5464 = vmatprep.subr.bf16.mxu0 %v6354_v4 }
  0xc3   :  { %5482 = vmatprep.subr.bf16.mxu1 %v6354_v4 }
  0xc5   :  { %5459 = vmatmul.mubr.msk.bf16.vlgmr.msra.gmra.mxu1 %vm4693_vm12, %v6366_v34  ;;  %5465 = vmatpush3.bf16.msra.mxu0 %v5659_v9 }
  0xc6   :  { %5483 = vmatpush3.bf16.msra.mxu1 %v5660_v10  ;;  %5466 = vmatprep.subr.bf16.mxu0 %v6354_v4 }
  0xc7   :  { %5484 = vmatprep.subr.bf16.mxu1 %v6354_v4  ;;  %5498 = vmatprep.mubr.msk.bf16.mxu1 %vm6357_vm0, %v6354_v4 }
  0xc9   :  { %5467 = vmatpush3.bf16.msra.mxu0 %v5661_v11 }
  0xca   :  { %5485 = vmatpush3.bf16.msra.mxu1 %v5662_v12  ;;  %5468 = vmatprep.subr.bf16.mxu0 %v6354_v4 }
  0xcb   :  { %5486 = vmatprep.subr.bf16.mxu1 %v6354_v4 }
  0xcd   :  { %5469 = vmatpush3.bf16.msra.mxu0 %v5663_v13 }
  0xce   :  { %5487 = vmatpush3.bf16.msra.mxu1 %v5664_v14  ;;  %5470 = vmatprep.subr.bf16.mxu0 %v6354_v4 }
  0xcf   :  { %5488 = vmatprep.subr.bf16.mxu1 %v6354_v4 }
  0xd1   :  { %5471 = vmatpush3.bf16.msra.mxu0 %v5665_v15 }
  0xd2   :  { %5489 = vmatpush3.bf16.msra.mxu1 %v5666_v16  ;;  %5472 = vmatprep.subr.bf16.mxu0 %v6354_v4 }
  0xd3   :  { %5490 = vmatprep.subr.bf16.mxu1 %v6354_v4 }
  0xd5   :  { %5473 = vmatpush3.bf16.msra.mxu0 %v5667_v17 }
  0xd6   :  { %5491 = vmatpush3.bf16.msra.mxu1 %v5668_v18  ;;  %5474 = vmatprep.subr.bf16.mxu0 %v6354_v4 }
  0xd7   :  { %5492 = vmatprep.subr.bf16.mxu1 %v6354_v4 }
  0xd9   :  { %5475 = vmatpush3.bf16.msra.mxu0 %v5669_v19 }
  0xda   :  { %5493 = vmatpush3.bf16.msra.mxu1 %v5670_v20  ;;  %5476 = vmatprep.subr.bf16.mxu0 %v6354_v4 }
  0xdb   :  { %5494 = vmatprep.subr.bf16.mxu1 %v6354_v4 }
  0xdd   :  { %5477 = vmatpush3.bf16.msra.mxu0 %v5671_v22 }
  0xde   :  { %5495 = vmatpush3.bf16.msra.mxu1 %v5672_v23  ;;  %5502 = vmatprep.subr.bf16.mxu0 %v6354_v4 }
  0xdf   :  { %5496 = vmatprep.subr.bf16.mxu1 %v6354_v4 }
  0xe0   :  { %5479 = vmatmul.mubr.msk.bf16.vlgmr.msra.gmra.mxu0 %vm4704_vm14, %v6366_v34 }
  0xe1   :  { %5503 = vmatpush3.bf16.msra.mxu0 %v5673_v24  ;;  %5518 = vmatprep.mubr.msk.bf16.mxu0 %vm6357_vm0, %v6354_v4 }
  0xe2   :  { %5497 = vmatpush3.bf16.msra.mxu1 %v5674_v26  ;;  %5504 = vmatprep.subr.bf16.mxu0 %v6354_v4 }
  0xe3   :  { %5522 = vmatprep.subr.bf16.mxu1 %v6354_v4 }
  0xe5   :  { %5499 = vmatmul.mubr.msk.bf16.vlgmr.msra.gmra.mxu1 %vm4715_vm1, %v6366_v34  ;;  %5505 = vmatpush3.bf16.msra.mxu0 %v5675_v27 }
  0xe6   :  { %5523 = vmatpush3.bf16.msra.mxu1 %v5676_v28  ;;  %5506 = vmatprep.subr.bf16.mxu0 %v6354_v4 }
  0xe7   :  { %5524 = vmatprep.subr.bf16.mxu1 %v6354_v4  ;;  %5538 = vmatprep.mubr.msk.bf16.mxu1 %vm6357_vm0, %v6354_v4 }
  0xe9   :  { %5507 = vmatpush3.bf16.msra.mxu0 %v5677_v29 }
  0xea   :  { %5525 = vmatpush3.bf16.msra.mxu1 %v5678_v32  ;;  %5508 = vmatprep.subr.bf16.mxu0 %v6354_v4 }
  0xeb   :  { %5526 = vmatprep.subr.bf16.mxu1 %v6354_v4 }
  0xed   :  { %5509 = vmatpush3.bf16.msra.mxu0 %v5679_v33 }
  0xee   :  { %5527 = vmatpush3.bf16.msra.mxu1 %v5680_v35  ;;  %5510 = vmatprep.subr.bf16.mxu0 %v6354_v4 }
  0xef   :  { %5528 = vmatprep.subr.bf16.mxu1 %v6354_v4 }
  0xf1   :  { %5511 = vmatpush3.bf16.msra.mxu0 %v5681_v36 }
  0xf2   :  { %5529 = vmatpush3.bf16.msra.mxu1 %v5682_v37  ;;  %5512 = vmatprep.subr.bf16.mxu0 %v6354_v4 }
  0xf3   :  { %5530 = vmatprep.subr.bf16.mxu1 %v6354_v4 }
  0xf5   :  { %5513 = vmatpush3.bf16.msra.mxu0 %v5683_v38 }
  0xf6   :  { %5531 = vmatpush3.bf16.msra.mxu1 %v5684_v39  ;;  %5514 = vmatprep.subr.bf16.mxu0 %v6354_v4 }
  0xf7   :  { %5532 = vmatprep.subr.bf16.mxu1 %v6354_v4 }
  0xf9   :  { %5515 = vmatpush3.bf16.msra.mxu0 %v5685_v40 }
  0xfa   :  { %5533 = vmatpush3.bf16.msra.mxu1 %v5686_v41  ;;  %5516 = vmatprep.subr.bf16.mxu0 %v6354_v4 }
  0xfb   :  { %5534 = vmatprep.subr.bf16.mxu1 %v6354_v4 }
  0xfd   :  { %5517 = vmatpush3.bf16.msra.mxu0 %v5687_v43 }
  0xfe   :  { %5535 = vmatpush3.bf16.msra.mxu1 %v5688_v44  ;;  %5542 = vmatprep.subr.bf16.mxu0 %v6354_v4 }
  0xff   :  { %5536 = vmatprep.subr.bf16.mxu1 %v6354_v4 }
 0x100   :  { %5519 = vmatmul.mubr.msk.bf16.vlgmr.msra.gmra.mxu0 %vm4726_vm3, %v6366_v34 }
 0x101   :  { %5543 = vmatpush3.bf16.msra.mxu0 %v5689_v45  ;;  %5558 = vmatprep.mubr.msk.bf16.mxu0 %vm6357_vm0, %v6354_v4 }
 0x102   :  { %5537 = vmatpush3.bf16.msra.mxu1 %v5690_v47  ;;  %5544 = vmatprep.subr.bf16.mxu0 %v6354_v4 }
 0x103   :  { %5562 = vmatprep.subr.bf16.mxu1 %v6354_v4 }
 0x105   :  { %5539 = vmatmul.mubr.msk.bf16.vlgmr.msra.gmra.mxu1 %vm4737_vm5, %v6366_v34  ;;  %5545 = vmatpush3.bf16.msra.mxu0 %v5691_v48 }
 0x106   :  { %5563 = vmatpush3.bf16.msra.mxu1 %v5692_v49  ;;  %5546 = vmatprep.subr.bf16.mxu0 %v6354_v4 }
 0x107   :  { %5564 = vmatprep.subr.bf16.mxu1 %v6354_v4  ;;  %5578 = vmatprep.mubr.msk.bf16.mxu1 %vm6357_vm0, %v6354_v4  ;;  %vm1164_vm0 = vcmp.eq.s32.totalorder %v1163_v60, %v6496_v31  ;;  %v5714_v31 = vld [vmem:[%s8196_s3 + $0xa4] ss:$16 sps:$4 sm:$0xff]  }
 0x108   :  { %vm4748_vm6 = vmpackc.low %vm1164_vm0, %vm1164_vm0 }
 0x109   :  { %5547 = vmatpush3.bf16.msra.mxu0 %v5693_v50 }
 0x10a   :  { %5565 = vmatpush3.bf16.msra.mxu1 %v5694_v51  ;;  %5548 = vmatprep.subr.bf16.mxu0 %v6354_v4 }
 0x10b   :  { %5566 = vmatprep.subr.bf16.mxu1 %v6354_v4 }
 0x10d   :  { %5549 = vmatpush3.bf16.msra.mxu0 %v5695_v52 }
 0x10e   :  { %5567 = vmatpush3.bf16.msra.mxu1 %v5696_v53  ;;  %5550 = vmatprep.subr.bf16.mxu0 %v6354_v4 }
 0x10f   :  { %5568 = vmatprep.subr.bf16.mxu1 %v6354_v4 }
 0x111   :  { %5551 = vmatpush3.bf16.msra.mxu0 %v5697_v54 }
 0x112   :  { %5569 = vmatpush3.bf16.msra.mxu1 %v5698_v55  ;;  %5552 = vmatprep.subr.bf16.mxu0 %v6354_v4 }
 0x113   :  { %5570 = vmatprep.subr.bf16.mxu1 %v6354_v4 }
 0x115   :  { %5553 = vmatpush3.bf16.msra.mxu0 %v5699_v56 }
 0x116   :  { %5571 = vmatpush3.bf16.msra.mxu1 %v5700_v57  ;;  %5554 = vmatprep.subr.bf16.mxu0 %v6354_v4 }
 0x117   :  { %5572 = vmatprep.subr.bf16.mxu1 %v6354_v4 }
 0x119   :  { %5555 = vmatpush3.bf16.msra.mxu0 %v5701_v58 }
 0x11a   :  { %5573 = vmatpush3.bf16.msra.mxu1 %v5702_v59  ;;  %5556 = vmatprep.subr.bf16.mxu0 %v6354_v4 }
 0x11b   :  { %5574 = vmatprep.subr.bf16.mxu1 %v6354_v4 }
 0x11d   :  { %5557 = vmatpush3.bf16.msra.mxu0 %v5703_v61 }
 0x11e   :  { %5575 = vmatpush3.bf16.msra.mxu1 %v5704_v62  ;;  %3761 = vmatprep.subr.bf16.mxu0 %v5707_v63 }
 0x11f   :  { %5576 = vmatprep.subr.bf16.mxu1 %v6354_v4  ;;  %v5721_v4 = vld [vmem:[%s8196_s3 + $0x2e0] ss:$16 sps:$4 sm:$0xff]  }
 0x120   :  { %5559 = vmatmul.mubr.msk.bf16.vlgmr.msra.gmra.mxu0 %vm4748_vm6, %v6366_v34 }
 0x121   :  { %3762 = vmatpush1.bf16.msra.mxu0 %v5705_v1 }
 0x122   :  { %5577 = vmatpush3.bf16.msra.mxu1 %v5708_v2  ;;  %3763 = vmatprep.subr.bf16.mxu0 %v5711_v3 }
 0x123   :  { %3802 = vmatprep.subr.bf16.mxu1 %v5723_v6 }
 0x124   :  { %12 = vsyncpa [#allocation4], 0  ;;  %v5712_v8 = vld [vmem:[%s8196_s3 + $0xa0] ss:$16 sps:$4 sm:$0xff]   ;;  %v5717_v9 = vld [vmem:[%s8196_s3 + $0x84] ss:$16 sps:$4 sm:$0xff]  }
 0x125   :  { %5579 = vmatmul.mubr.msk.bf16.vlgmr.msra.gmra.mxu1 %vm4759_vm8, %v6366_v34  ;;  %3764 = vmatpush1.bf16.msra.mxu0 %v5709_v5  ;;  %v5727_v10 = vld [vmem:[%s8196_s3 + $0x2c0] ss:$16 sps:$4 sm:$0xff]   ;;  %v5735_v34 = vld [vmem:[%s8196_s3 + $0x2a4] ss:$16 sps:$4 sm:$0xff]  }
 0x126   :  { %3765 = vmatprep.subr.bf16.mxu0 %v5714_v31  ;;  %3803 = vmatpush1.bf16.msra.mxu1 %v5721_v4  ;;  %v5715_v11 = vld [vmem:[%s8196_s3 + $0x80] ss:$16 sps:$4 sm:$0xff]   ;;  %v5720_v12 = vld [vmem:[%s8196_s3 + $0x64] ss:$16 sps:$4 sm:$0xff]  }
 0x127   :  { %3804 = vmatprep.subr.bf16.mxu1 %v5729_v7  ;;  %v5733_v13 = vld [vmem:[%s8196_s3 + $0x2a0] ss:$16 sps:$4 sm:$0xff]   ;;  %v5741_v14 = vld [vmem:[%s8196_s3 + $0x284] ss:$16 sps:$4 sm:$0xff]  }
 0x128   :  { %v5718_v15 = vld [vmem:[%s8196_s3 + $0x60] ss:$16 sps:$4 sm:$0xff]   ;;  %v5726_v16 = vld [vmem:[%s8196_s3 + $0x44] ss:$16 sps:$4 sm:$0xff]  }
 0x129   :  { %3766 = vmatpush1.bf16.msra.mxu0 %v5712_v8  ;;  %v5739_v17 = vld [vmem:[%s8196_s3 + $0x280] ss:$16 sps:$4 sm:$0xff]   ;;  %v5747_v18 = vld [vmem:[%s8196_s3 + $0x264] ss:$16 sps:$4 sm:$0xff]  }
 0x12a   :  { %3767 = vmatprep.subr.bf16.mxu0 %v5717_v9  ;;  %3805 = vmatpush1.bf16.msra.mxu1 %v5727_v10  ;;  %v5724_v19 = vld [vmem:[%s8196_s3 + $0x40] ss:$16 sps:$4 sm:$0xff]   ;;  %v5732_v20 = vld [vmem:[%s8196_s3 + $0x24] ss:$16 sps:$4 sm:$0xff]  }
 0x12b   :  { %3806 = vmatprep.subr.bf16.mxu1 %v5735_v34  ;;  %v5745_v21 = vld [vmem:[%s8196_s3 + $0x260] ss:$16 sps:$4 sm:$0xff]   ;;  %v5753_v22 = vld [vmem:[%s8196_s3 + $0x244] ss:$16 sps:$4 sm:$0xff]  }
 0x12c   :  { %v5730_v23 = vld [vmem:[%s8196_s3 + $0x20] ss:$16 sps:$4 sm:$0xff]   ;;  %v5738_v24 = vld [vmem:[%s8196_s3 + $0x4] ss:$16 sps:$4 sm:$0xff]  }
 0x12d   :  { %3768 = vmatpush1.bf16.msra.mxu0 %v5715_v11  ;;  %v5751_v25 = vld [vmem:[%s8196_s3 + $0x240] ss:$16 sps:$4 sm:$0xff]   ;;  %v5759_v26 = vld [vmem:[%s8196_s3 + $0x224] ss:$16 sps:$4 sm:$0xff]  }
 0x12e   :  { %3769 = vmatprep.subr.bf16.mxu0 %v5720_v12  ;;  %3807 = vmatpush1.bf16.msra.mxu1 %v5733_v13  ;;  %v5736_v27 = vld [vmem:[%s8196_s3] ss:$16 sps:$4 sm:$0xff]   ;;  %v5744_v28 = vld [vmem:[%s8196_s3 + $0x1e4] ss:$16 sps:$4 sm:$0xff]  }
 0x12f   :  { %3808 = vmatprep.subr.bf16.mxu1 %v5741_v14  ;;  %v5757_v29 = vld [vmem:[%s8196_s3 + $0x220] ss:$16 sps:$4 sm:$0xff]   ;;  %v5765_v32 = vld [vmem:[%s8196_s3 + $0x204] ss:$16 sps:$4 sm:$0xff]  }
 0x130   :  { %v5742_v33 = vld [vmem:[%s8196_s3 + $0x1e0] ss:$16 sps:$4 sm:$0xff]   ;;  %v5750_v35 = vld [vmem:[%s8196_s3 + $0x1c4] ss:$16 sps:$4 sm:$0xff]  }
 0x131   :  { %3770 = vmatpush1.bf16.msra.mxu0 %v5718_v15  ;;  %v5763_v36 = vld [vmem:[%s8196_s3 + $0x200] ss:$16 sps:$4 sm:$0xff]   ;;  %v5771_v37 = vld [vmem:[%s8196_s3 + $0x3e4] ss:$16 sps:$4 sm:$0xff]  }
 0x132   :  { %3771 = vmatprep.subr.bf16.mxu0 %v5726_v16  ;;  %3809 = vmatpush1.bf16.msra.mxu1 %v5739_v17  ;;  %v5748_v40 = vld [vmem:[%s8196_s3 + $0x1c0] ss:$16 sps:$4 sm:$0xff]   ;;  %v5756_v42 = vld [vmem:[%s8196_s3 + $0x1a4] ss:$16 sps:$4 sm:$0xff]  }
 0x133   :  { %3810 = vmatprep.subr.bf16.mxu1 %v5747_v18  ;;  %v5769_v43 = vld [vmem:[%s8196_s3 + $0x3e0] ss:$16 sps:$4 sm:$0xff]   ;;  %v5779_v44 = vld [vmem:[%s8196_s3 + $0x3c4] ss:$16 sps:$4 sm:$0xff]  }
 0x134   :  { %v5754_v47 = vld [vmem:[%s8196_s3 + $0x1a0] ss:$16 sps:$4 sm:$0xff]   ;;  %v5762_v50 = vld [vmem:[%s8196_s3 + $0x184] ss:$16 sps:$4 sm:$0xff]  }
 0x135   :  { %3772 = vmatpush1.bf16.msra.mxu0 %v5724_v19  ;;  %v5777_v51 = vld [vmem:[%s8196_s3 + $0x3c0] ss:$16 sps:$4 sm:$0xff]   ;;  %v5785_v53 = vld [vmem:[%s8196_s3 + $0x3a4] ss:$16 sps:$4 sm:$0xff]  }
 0x136   :  { %3773 = vmatprep.subr.bf16.mxu0 %v5732_v20  ;;  %3811 = vmatpush1.bf16.msra.mxu1 %v5745_v21  ;;  %v5760_v55 = vld [vmem:[%s8196_s3 + $0x180] ss:$16 sps:$4 sm:$0xff]   ;;  %v5768_v56 = vld [vmem:[%s8196_s3 + $0x164] ss:$16 sps:$4 sm:$0xff]  }
 0x137   :  { %3812 = vmatprep.subr.bf16.mxu1 %v5753_v22  ;;  %v5783_v57 = vld [vmem:[%s8196_s3 + $0x3a0] ss:$16 sps:$4 sm:$0xff]   ;;  %v5791_v59 = vld [vmem:[%s8196_s3 + $0x384] ss:$16 sps:$4 sm:$0xff]  }
 0x138   :  { %v5766_v60 = vld [vmem:[%s8196_s3 + $0x160] ss:$16 sps:$4 sm:$0xff]   ;;  %v5776_v61 = vld [vmem:[%s8196_s3 + $0x144] ss:$16 sps:$4 sm:$0xff]  }
 0x139   :  { %3774 = vmatpush1.bf16.msra.mxu0 %v5730_v23  ;;  %v5789_v63 = vld [vmem:[%s8196_s3 + $0x380] ss:$16 sps:$4 sm:$0xff]   ;;  %v5797_v1 = vld [vmem:[%s8196_s3 + $0x364] ss:$16 sps:$4 sm:$0xff]  }
 0x13a   :  { %3775 = vmatprep.subr.bf16.mxu0 %v5738_v24  ;;  %3813 = vmatpush1.bf16.msra.mxu1 %v5751_v25  ;;  %v5774_v2 = vld [vmem:[%s8196_s3 + $0x140] ss:$16 sps:$4 sm:$0xff]   ;;  %v5782_v3 = vld [vmem:[%s8196_s3 + $0x124] ss:$16 sps:$4 sm:$0xff]  }
 0x13b   :  { %3814 = vmatprep.subr.bf16.mxu1 %v5759_v26  ;;  %v5795_v5 = vld [vmem:[%s8196_s3 + $0x360] ss:$16 sps:$4 sm:$0xff]   ;;  %v5803_v6 = vld [vmem:[%s8196_s3 + $0x344] ss:$16 sps:$4 sm:$0xff]  }
 0x13c   :  { %v5780_v31 = vld [vmem:[%s8196_s3 + $0x120] ss:$16 sps:$4 sm:$0xff]   ;;  %v5788_v4 = vld [vmem:[%s8196_s3 + $0x104] ss:$16 sps:$4 sm:$0xff]  }
 0x13d   :  { %3776 = vmatpush1.bf16.msra.mxu0 %v5736_v27  ;;  %v5801_v7 = vld [vmem:[%s8196_s3 + $0x340] ss:$16 sps:$4 sm:$0xff]   ;;  %v5809_v8 = vld [vmem:[%s8196_s3 + $0x324] ss:$16 sps:$4 sm:$0xff]  }
 0x13e   :  { %3777 = vmatprep.subr.bf16.mxu0 %v5744_v28  ;;  %3815 = vmatpush1.bf16.msra.mxu1 %v5757_v29  ;;  %v5786_v9 = vld [vmem:[%s8196_s3 + $0x100] ss:$16 sps:$4 sm:$0xff]   ;;  %v5794_v10 = vld [vmem:[%s8196_s3 + $0x4e4] ss:$16 sps:$4 sm:$0xff]  }
 0x13f   :  { %3816 = vmatprep.subr.bf16.mxu1 %v5765_v32  ;;  %v5807_v34 = vld [vmem:[%s8196_s3 + $0x320] ss:$16 sps:$4 sm:$0xff]   ;;  %v5815_v11 = vld [vmem:[%s8196_s3 + $0x304] ss:$16 sps:$4 sm:$0xff]  }
 0x140   :  { %v136_v38 = vpop.f32.mrf.mxu0  ;;  %v5792_v12 = vld [vmem:[%s8196_s3 + $0x4e0] ss:$16 sps:$4 sm:$0xff]   ;;  %v5800_v14 = vld [vmem:[%s8196_s3 + $0x4c4] ss:$16 sps:$4 sm:$0xff]  }
 0x141   :  { %v142_v39 = vpack.c.bf16 %v136_v38, %v136_v38  ;;  %3778 = vmatpush2.bf16.msra.mxu0 %v5742_v33  ;;  %v5813_v15 = vld [vmem:[%s8196_s3 + $0x300] ss:$16 sps:$4 sm:$0xff]   ;;  %v5823_v17 = vld [vmem:[%s8196_s3 + $0x6e4] ss:$16 sps:$4 sm:$0xff]  }
 0x142   :  { %v5360_v41 = vpop.f32.mrf.mxu0  ;;  %3779 = vmatprep.subr.bf16.mxu0 %v5750_v35  ;;  %3817 = vmatpush1.bf16.msra.mxu1 %v5763_v36  ;;  %v5798_v19 = vld [vmem:[%s8196_s3 + $0x4c0] ss:$16 sps:$4 sm:$0xff]   ;;  %v5806_v21 = vld [vmem:[%s8196_s3 + $0x4a4] ss:$16 sps:$4 sm:$0xff]  }
 0x143   :  { %143 = vst [vmem:[#allocation2] sm:$0xf] %v142_v39  ;;  %3818 = vmatprep.subr.bf16.mxu1 %v5771_v37  ;;  %v5804_v24 = vld [vmem:[%s8196_s3 + $0x4a0] ss:$16 sps:$4 sm:$0xff]   ;;  %v5812_v27 = vld [vmem:[%s8196_s3 + $0x484] ss:$16 sps:$4 sm:$0xff]  }
 0x144   :  { %v139_v45 = vpop.f32.mrf.mxu0  ;;  %v5810_v32 = vld [vmem:[%s8196_s3 + $0x480] ss:$16 sps:$4 sm:$0xff]   ;;  %v5818_v33 = vld [vmem:[%s8196_s3 + $0x464] ss:$16 sps:$4 sm:$0xff]  }
 0x145   :  { %3780 = vmatpush2.bf16.msra.mxu0 %v5748_v40  ;;  %v249_v46 = vpop.f32.mrf.mxu1  ;;  %v5816_v36 = vld [vmem:[%s8196_s3 + $0x460] ss:$16 sps:$4 sm:$0xff]   ;;  %v5826_v37 = vld [vmem:[%s8196_s3 + $0x444] ss:$16 sps:$4 sm:$0xff]  }
 0x146   :  { %v255_v48 = vpack.c.bf16 %v249_v46, %v249_v46  ;;  %v5361_v49 = vpop.f32.mrf.mxu0  ;;  %3781 = vmatprep.subr.bf16.mxu0 %v5756_v42  ;;  %3819 = vmatpush2.bf16.msra.mxu1 %v5769_v43  ;;  %v5821_v41 = vld [vmem:[%s8196_s3 + $0x6e0] ss:$16 sps:$4 sm:$0xff]   ;;  %v5829_v43 = vld [vmem:[%s8196_s3 + $0x6c4] ss:$16 sps:$4 sm:$0xff]  }
 0x147   :  { %v5380_v52 = vpop.f32.mrf.mxu1  ;;  %3820 = vmatprep.subr.bf16.mxu1 %v5779_v44  ;;  %v5824_v42 = vld [vmem:[%s8196_s3 + $0x440] ss:$16 sps:$4 sm:$0xff]   ;;  %v5832_v44 = vld [vmem:[%s8196_s3 + $0x424] ss:$16 sps:$4 sm:$0xff]  }
 0x148   :  { %256 = vst [vmem:[#allocation2 + $0x4] sm:$0xf] %v255_v48  ;;  %v5827_v45 = vld [vmem:[%s8196_s3 + $0x6c0] ss:$16 sps:$4 sm:$0xff]   ;;  %v5838_v48 = vld [vmem:[%s8196_s3 + $0x404] ss:$16 sps:$4 sm:$0xff]  }
 0x149   :  { %3782 = vmatpush2.bf16.msra.mxu0 %v5754_v47  ;;  %v252_v54 = vpop.f32.mrf.mxu1  ;;  %v5830_v46 = vld [vmem:[%s8196_s3 + $0x420] ss:$16 sps:$4 sm:$0xff]   ;;  %v5835_v47 = vld [vmem:[%s8196_s3 + $0x6a4] ss:$16 sps:$4 sm:$0xff]  }
 0x14a   :  { %3783 = vmatprep.subr.bf16.mxu0 %v5762_v50  ;;  %3821 = vmatpush2.bf16.msra.mxu1 %v5777_v51  ;;  %v5833_v49 = vld [vmem:[%s8196_s3 + $0x6a0] ss:$16 sps:$4 sm:$0xff]   ;;  %v5841_v51 = vld [vmem:[%s8196_s3 + $0x684] ss:$16 sps:$4 sm:$0xff]  }
 0x14b   :  { %v5381_v58 = vpop.f32.mrf.mxu1  ;;  %3822 = vmatprep.subr.bf16.mxu1 %v5785_v53  ;;  %v5836_v50 = vld [vmem:[%s8196_s3 + $0x400] ss:$16 sps:$4 sm:$0xff]   ;;  %v5844_v52 = vld [vmem:[%s8196_s3 + $0x5e4] ss:$16 sps:$4 sm:$0xff]  }
 0x14c   :  { %v5839_v53 = vld [vmem:[%s8196_s3 + $0x680] ss:$16 sps:$4 sm:$0xff]  }
 0x14d   :  { %3784 = vmatpush2.bf16.msra.mxu0 %v5760_v55  ;;  %v5842_v54 = vld [vmem:[%s8196_s3 + $0x5e0] ss:$16 sps:$4 sm:$0xff]   ;;  %v5847_v55 = vld [vmem:[%s8196_s3 + $0x664] ss:$16 sps:$4 sm:$0xff]  }
 0x14e   :  { %3785 = vmatprep.subr.bf16.mxu0 %v5768_v56  ;;  %3823 = vmatpush2.bf16.msra.mxu1 %v5783_v57  ;;  %v5850_v56 = vld [vmem:[%s8196_s3 + $0x5c4] ss:$16 sps:$4 sm:$0xff]   ;;  %v5845_v58 = vld [vmem:[%s8196_s3 + $0x660] ss:$16 sps:$4 sm:$0xff]  }
 0x14f   :  { %v1387_v62 = vld [vmem:[#allocation2] sm:$0xff]  ;;  %3824 = vmatprep.subr.bf16.mxu1 %v5791_v59 }
 0x150   :  { %v7013_v0 = vcombine.high %v1387_v62, %v1387_v62  ;;  %v7058_v13 = vcombine.low %v1387_v62, %v1387_v62 }
 0x151   :  { %3786 = vmatpush2.bf16.msra.mxu0 %v5766_v60  ;;  %v5848_v60 = vld [vmem:[%s8196_s3 + $0x5c0] ss:$16 sps:$4 sm:$0xff]  }
 0x152   :  { %3793 = vmatprep.mubr.bf16.mxu0 %v7013_v0  ;;  %3787 = vmatprep.subr.bf16.mxu0 %v5776_v61  ;;  %v5853_v61 = vld [vmem:[%s8196_s3 + $0x644] ss:$16 sps:$4 sm:$0xff]  }
 0x153   :  { %3825 = vmatpush2.bf16.msra.mxu1 %v5789_v63  ;;  %v5856_v63 = vld [vmem:[%s8196_s3 + $0x5a4] ss:$16 sps:$4 sm:$0xff]  }
 0x154   :  { %3826 = vmatprep.subr.bf16.mxu1 %v5797_v1 }
 0x155   :  { %3788 = vmatpush2.bf16.msra.mxu0 %v5774_v2  ;;  %v5851_v2 = vld [vmem:[%s8196_s3 + $0x640] ss:$16 sps:$4 sm:$0xff]  }
 0x156   :  { %3789 = vmatprep.subr.bf16.mxu0 %v5782_v3 }
 0x157   :  { %3827 = vmatpush2.bf16.msra.mxu1 %v5795_v5  ;;  %v5854_v5 = vld [vmem:[%s8196_s3 + $0x5a0] ss:$16 sps:$4 sm:$0xff]  }
 0x158   :  { %3828 = vmatprep.subr.bf16.mxu1 %v5803_v6  ;;  %v5859_v6 = vld [vmem:[%s8196_s3 + $0x624] ss:$16 sps:$4 sm:$0xff]  }
 0x159   :  { %3790 = vmatpush2.bf16.msra.mxu0 %v5780_v31 }
 0x15a   :  { %3791 = vmatprep.subr.bf16.mxu0 %v5788_v4 }
 0x15b   :  { %3829 = vmatpush2.bf16.msra.mxu1 %v5801_v7  ;;  %v5862_v7 = vld [vmem:[%s8196_s3 + $0x584] ss:$16 sps:$4 sm:$0xff]  }
 0x15c   :  { %3830 = vmatprep.subr.bf16.mxu1 %v5809_v8 }
 0x15d   :  { %3792 = vmatpush2.bf16.msra.mxu0 %v5786_v9  ;;  %v5857_v9 = vld [vmem:[%s8196_s3 + $0x620] ss:$16 sps:$4 sm:$0xff]  }
 0x15e   :  { %3843 = vmatprep.subr.bf16.mxu0 %v5794_v10 }
 0x15f   :  { %3831 = vmatpush2.bf16.msra.mxu1 %v5807_v34  ;;  %v5860_v34 = vld [vmem:[%s8196_s3 + $0x580] ss:$16 sps:$4 sm:$0xff]  }
 0x160   :  { %v362_v16 = vpop.f32.mrf.mxu0  ;;  %3794 = vmatmul.mubr.bf16.vlgmr.msra.gmra.mxu0 %v7058_v13  ;;  %3832 = vmatprep.subr.bf16.mxu1 %v5815_v11  ;;  %v5865_v11 = vld [vmem:[%s8196_s3 + $0x604] ss:$16 sps:$4 sm:$0xff]  }
 0x161   :  { %v368_v18 = vpack.c.bf16 %v362_v16, %v362_v16  ;;  %3844 = vmatpush1.bf16.msra.mxu0 %v5792_v12  ;;  %v5868_v12 = vld [vmem:[%s8196_s3 + $0x564] ss:$16 sps:$4 sm:$0xff]   ;;  %v5866_v16 = vld [vmem:[%s8196_s3 + $0x560] ss:$16 sps:$4 sm:$0xff]  }
 0x162   :  { %v5400_v20 = vpop.f32.mrf.mxu0  ;;  %3845 = vmatprep.subr.bf16.mxu0 %v5800_v14 }
 0x163   :  { %369 = vst [vmem:[#allocation2 + $0x8] sm:$0xf] %v368_v18  ;;  %3833 = vmatpush2.bf16.msra.mxu1 %v5813_v15  ;;  %v5863_v15 = vld [vmem:[%s8196_s3 + $0x600] ss:$16 sps:$4 sm:$0xff]   ;;  %v5876_v18 = vld [vmem:[%s8196_s3 + $0x544] ss:$16 sps:$4 sm:$0xff]  }
 0x164   :  { %v365_v22 = vpop.f32.mrf.mxu0  ;;  %3884 = vmatprep.subr.bf16.mxu1 %v5823_v17  ;;  %v5871_v17 = vld [vmem:[%s8196_s3 + $0x7e4] ss:$16 sps:$4 sm:$0xff]   ;;  %v5869_v20 = vld [vmem:[%s8196_s3 + $0x7e0] ss:$16 sps:$4 sm:$0xff]  }
 0x165   :  { %v475_v23 = vpop.f32.mrf.mxu1  ;;  %3846 = vmatpush1.bf16.msra.mxu0 %v5798_v19  ;;  %v5874_v22 = vld [vmem:[%s8196_s3 + $0x540] ss:$16 sps:$4 sm:$0xff]  }
 0x166   :  { %v481_v25 = vpack.c.bf16 %v475_v23, %v475_v23  ;;  %v5401_v26 = vpop.f32.mrf.mxu0  ;;  %3847 = vmatprep.subr.bf16.mxu0 %v5806_v21  ;;  %v5879_v23 = vld [vmem:[%s8196_s3 + $0x7c4] ss:$16 sps:$4 sm:$0xff]  }
 0x167   :  { %v5420_v28 = vpop.f32.mrf.mxu1  ;;  %v5880_v26 = vld [vmem:[%s8196_s3 + $0x520] ss:$16 sps:$4 sm:$0xff]  }
 0x168   :  { %482 = vst [vmem:[#allocation2 + $0xc] sm:$0xf] %v481_v25  ;;  %v5877_v25 = vld [vmem:[%s8196_s3 + $0x7c0] ss:$16 sps:$4 sm:$0xff]   ;;  %v5888_v28 = vld [vmem:[%s8196_s3 + $0x504] ss:$16 sps:$4 sm:$0xff]  }
 0x169   :  { %v478_v29 = vpop.f32.mrf.mxu1  ;;  %3848 = vmatpush1.bf16.msra.mxu0 %v5804_v24  ;;  %v5882_v24 = vld [vmem:[%s8196_s3 + $0x524] ss:$16 sps:$4 sm:$0xff]  }
 0x16a   :  { %3849 = vmatprep.subr.bf16.mxu0 %v5812_v27  ;;  %v5885_v27 = vld [vmem:[%s8196_s3 + $0x7a4] ss:$16 sps:$4 sm:$0xff]   ;;  %v5883_v29 = vld [vmem:[%s8196_s3 + $0x7a0] ss:$16 sps:$4 sm:$0xff]  }
 0x16b   :  { %v5421_v35 = vpop.f32.mrf.mxu1 }
 0x16c   :  { %v5894_v35 = vld [vmem:[%s8196_s3 + $0x8e4] ss:$16 sps:$4 sm:$0xff]  }
 0x16d   :  { %3850 = vmatpush1.bf16.msra.mxu0 %v5810_v32  ;;  %v5886_v32 = vld [vmem:[%s8196_s3 + $0x500] ss:$16 sps:$4 sm:$0xff]  }
 0x16e   :  { %3851 = vmatprep.subr.bf16.mxu0 %v5818_v33  ;;  %v5891_v33 = vld [vmem:[%s8196_s3 + $0x784] ss:$16 sps:$4 sm:$0xff]  }
 0x16f   :  { %v1388_v38 = vld [vmem:[#allocation2 + $0x8] sm:$0xff] }
 0x170   :  { %v7094_v39 = vcombine.low %v1388_v38, %v1388_v38  ;;  %v7096_v40 = vcombine.high %v1388_v38, %v1388_v38  ;;  %v5897_v38 = vld [vmem:[%s8196_s3 + $0x764] ss:$16 sps:$4 sm:$0xff]  }
 0x171   :  { %3852 = vmatpush1.bf16.msra.mxu0 %v5816_v36  ;;  %v5889_v36 = vld [vmem:[%s8196_s3 + $0x780] ss:$16 sps:$4 sm:$0xff]  }
 0x172   :  { %3834 = vmatprep.mubr.bf16.mxu1 %v7096_v40  ;;  %3853 = vmatprep.subr.bf16.mxu0 %v5826_v37  ;;  %v5892_v37 = vld [vmem:[%s8196_s3 + $0x8e0] ss:$16 sps:$4 sm:$0xff]  }
 0x173   :  { %3835 = vmatmul.mubr.bf16.vlgmr.msra.gmra.mxu1 %v7094_v39 }
 0x174   :  { %3885 = vmatpush1.bf16.msra.mxu1 %v5821_v41 }
 0x175   :  { %3854 = vmatpush1.bf16.msra.mxu0 %v5824_v42  ;;  %3886 = vmatprep.subr.bf16.mxu1 %v5829_v43  ;;  %v5900_v42 = vld [vmem:[%s8196_s3 + $0x8c4] ss:$16 sps:$4 sm:$0xff]  }
 0x176   :  { %3855 = vmatprep.subr.bf16.mxu0 %v5832_v44  ;;  %v5895_v44 = vld [vmem:[%s8196_s3 + $0x760] ss:$16 sps:$4 sm:$0xff]  }
 0x178   :  { %3887 = vmatpush1.bf16.msra.mxu1 %v5827_v45 }
 0x179   :  { %3856 = vmatpush1.bf16.msra.mxu0 %v5830_v46  ;;  %3888 = vmatprep.subr.bf16.mxu1 %v5835_v47  ;;  %v5898_v46 = vld [vmem:[%s8196_s3 + $0x8c0] ss:$16 sps:$4 sm:$0xff]   ;;  %v5903_v47 = vld [vmem:[%s8196_s3 + $0x744] ss:$16 sps:$4 sm:$0xff]  }
 0x17a   :  { %3857 = vmatprep.subr.bf16.mxu0 %v5838_v48 }
 0x17c   :  { %3889 = vmatpush1.bf16.msra.mxu1 %v5833_v49  ;;  %v5906_v49 = vld [vmem:[%s8196_s3 + $0x8a4] ss:$16 sps:$4 sm:$0xff]  }
 0x17d   :  { %3858 = vmatpush1.bf16.msra.mxu0 %v5836_v50  ;;  %3890 = vmatprep.subr.bf16.mxu1 %v5841_v51  ;;  %v5901_v51 = vld [vmem:[%s8196_s3 + $0x740] ss:$16 sps:$4 sm:$0xff]  }
 0x17e   :  { %3859 = vmatprep.subr.bf16.mxu0 %v5844_v52 }
 0x180   :  { %3891 = vmatpush1.bf16.msra.mxu1 %v5839_v53  ;;  %v588_v57 = vpop.f32.mrf.mxu0  ;;  %v5904_v53 = vld [vmem:[%s8196_s3 + $0x8a0] ss:$16 sps:$4 sm:$0xff]  }
 0x181   :  { %v594_v59 = vpack.c.bf16 %v588_v57, %v588_v57  ;;  %3860 = vmatpush2.bf16.msra.mxu0 %v5842_v54  ;;  %3892 = vmatprep.subr.bf16.mxu1 %v5847_v55  ;;  %v5909_v54 = vld [vmem:[%s8196_s3 + $0x724] ss:$16 sps:$4 sm:$0xff]  }
 0x182   :  { %v5440_v62 = vpop.f32.mrf.mxu0  ;;  %3861 = vmatprep.subr.bf16.mxu0 %v5850_v56  ;;  %v5912_v57 = vld [vmem:[%s8196_s3 + $0x884] ss:$16 sps:$4 sm:$0xff]  }
 0x183   :  { %595 = vst [vmem:[#allocation2 + $0x10] sm:$0xf] %v594_v59  ;;  %v5907_v59 = vld [vmem:[%s8196_s3 + $0x720] ss:$16 sps:$4 sm:$0xff]   ;;  %v5915_v62 = vld [vmem:[%s8196_s3 + $0x704] ss:$16 sps:$4 sm:$0xff]  }
 0x184   :  { %3893 = vmatpush1.bf16.msra.mxu1 %v5845_v58  ;;  %v591_v1 = vpop.f32.mrf.mxu0 }
 0x185   :  { %v701_v3 = vpop.f32.mrf.mxu1  ;;  %3862 = vmatpush2.bf16.msra.mxu0 %v5848_v60  ;;  %3894 = vmatprep.subr.bf16.mxu1 %v5853_v61  ;;  %v5910_v61 = vld [vmem:[%s8196_s3 + $0x880] ss:$16 sps:$4 sm:$0xff]  }
 0x186   :  { %v707_v31 = vpack.c.bf16 %v701_v3, %v701_v3  ;;  %v5441_v4 = vpop.f32.mrf.mxu0  ;;  %3863 = vmatprep.subr.bf16.mxu0 %v5856_v63  ;;  %v5918_v63 = vld [vmem:[%s8196_s3 + $0x864] ss:$16 sps:$4 sm:$0xff]   ;;  %v5916_v3 = vld [vmem:[%s8196_s3 + $0x860] ss:$16 sps:$4 sm:$0xff]  }
 0x187   :  { %v5460_v8 = vpop.f32.mrf.mxu1 }
 0x188   :  { %708 = vst [vmem:[#allocation2 + $0x14] sm:$0xf] %v707_v31  ;;  %3895 = vmatpush1.bf16.msra.mxu1 %v5851_v2  ;;  %v5913_v2 = vld [vmem:[%s8196_s3 + $0x700] ss:$16 sps:$4 sm:$0xff]  }
 0x189   :  { %v704_v10 = vpop.f32.mrf.mxu1  ;;  %3864 = vmatpush2.bf16.msra.mxu0 %v5854_v5  ;;  %3896 = vmatprep.subr.bf16.mxu1 %v5859_v6  ;;  %v5923_v5 = vld [vmem:[%s8196_s3 + $0xae4] ss:$16 sps:$4 sm:$0xff]   ;;  %v5921_v8 = vld [vmem:[%s8196_s3 + $0xae0] ss:$16 sps:$4 sm:$0xff]  }
 0x18a   :  { %3865 = vmatprep.subr.bf16.mxu0 %v5862_v7  ;;  %v5926_v6 = vld [vmem:[%s8196_s3 + $0x844] ss:$16 sps:$4 sm:$0xff]  }
 0x18b   :  { %v5461_v14 = vpop.f32.mrf.mxu1  ;;  %v5929_v10 = vld [vmem:[%s8196_s3 + $0xac4] ss:$16 sps:$4 sm:$0xff]  }
 0x18c   :  { %3897 = vmatpush1.bf16.msra.mxu1 %v5857_v9  ;;  %v5924_v9 = vld [vmem:[%s8196_s3 + $0x840] ss:$16 sps:$4 sm:$0xff]   ;;  %v5935_v14 = vld [vmem:[%s8196_s3 + $0xaa4] ss:$16 sps:$4 sm:$0xff]  }
 0x18d   :  { %3866 = vmatpush2.bf16.msra.mxu0 %v5860_v34  ;;  %3898 = vmatprep.subr.bf16.mxu1 %v5865_v11  ;;  %v5932_v34 = vld [vmem:[%s8196_s3 + $0x824] ss:$16 sps:$4 sm:$0xff]   ;;  %v5927_v11 = vld [vmem:[%s8196_s3 + $0xac0] ss:$16 sps:$4 sm:$0xff]  }
 0x18e   :  { %3867 = vmatprep.subr.bf16.mxu0 %v5868_v12  ;;  %v5930_v12 = vld [vmem:[%s8196_s3 + $0x820] ss:$16 sps:$4 sm:$0xff]  }
 0x18f   :  { %v1389_v19 = vld [vmem:[#allocation2 + $0x10] sm:$0xff] }
 0x190   :  { %3899 = vmatpush1.bf16.msra.mxu1 %v5863_v15  ;;  %v7199_v21 = vcombine.high %v1389_v19, %v1389_v19  ;;  %v7244_v41 = vcombine.low %v1389_v19, %v1389_v19  ;;  %v5938_v15 = vld [vmem:[%s8196_s3 + $0x804] ss:$16 sps:$4 sm:$0xff]  }
 0x191   :  { %3868 = vmatpush2.bf16.msra.mxu0 %v5866_v16  ;;  %3900 = vmatprep.subr.bf16.mxu1 %v5871_v17  ;;  %v5933_v16 = vld [vmem:[%s8196_s3 + $0xaa0] ss:$16 sps:$4 sm:$0xff]   ;;  %v5944_v19 = vld [vmem:[%s8196_s3 + $0x9e4] ss:$16 sps:$4 sm:$0xff]  }
 0x192   :  { %3875 = vmatprep.mubr.bf16.mxu0 %v7199_v21  ;;  %3869 = vmatprep.subr.bf16.mxu0 %v5876_v18  ;;  %v5936_v17 = vld [vmem:[%s8196_s3 + $0x800] ss:$16 sps:$4 sm:$0xff]   ;;  %v5941_v18 = vld [vmem:[%s8196_s3 + $0xa84] ss:$16 sps:$4 sm:$0xff]  }
 0x194   :  { %3901 = vmatpush2.bf16.msra.mxu1 %v5869_v20  ;;  %v5939_v20 = vld [vmem:[%s8196_s3 + $0xa80] ss:$16 sps:$4 sm:$0xff]  }
 0x195   :  { %3870 = vmatpush2.bf16.msra.mxu0 %v5874_v22  ;;  %3902 = vmatprep.subr.bf16.mxu1 %v5879_v23  ;;  %v5942_v22 = vld [vmem:[%s8196_s3 + $0x9e0] ss:$16 sps:$4 sm:$0xff]   ;;  %v5947_v23 = vld [vmem:[%s8196_s3 + $0xa64] ss:$16 sps:$4 sm:$0xff]  }
 0x196   :  { %3871 = vmatprep.subr.bf16.mxu0 %v5882_v24  ;;  %v5950_v24 = vld [vmem:[%s8196_s3 + $0x9c4] ss:$16 sps:$4 sm:$0xff]  }
 0x198   :  { %3903 = vmatpush2.bf16.msra.mxu1 %v5877_v25 }
 0x199   :  { %3872 = vmatpush2.bf16.msra.mxu0 %v5880_v26  ;;  %3904 = vmatprep.subr.bf16.mxu1 %v5885_v27  ;;  %v5945_v26 = vld [vmem:[%s8196_s3 + $0xa60] ss:$16 sps:$4 sm:$0xff]  }
 0x19a   :  { %3873 = vmatprep.subr.bf16.mxu0 %v5888_v28  ;;  %v5948_v28 = vld [vmem:[%s8196_s3 + $0x9c0] ss:$16 sps:$4 sm:$0xff]  }
 0x19c   :  { %3905 = vmatpush2.bf16.msra.mxu1 %v5883_v29  ;;  %v5953_v29 = vld [vmem:[%s8196_s3 + $0xa44] ss:$16 sps:$4 sm:$0xff]  }
 0x19d   :  { %3874 = vmatpush2.bf16.msra.mxu0 %v5886_v32  ;;  %3906 = vmatprep.subr.bf16.mxu1 %v5891_v33  ;;  %v5956_v33 = vld [vmem:[%s8196_s3 + $0x9a4] ss:$16 sps:$4 sm:$0xff]  }
 0x19e   :  { %3925 = vmatprep.subr.bf16.mxu0 %v5894_v35 }
 0x1a0   :  { %3907 = vmatpush2.bf16.msra.mxu1 %v5889_v36  ;;  %v814_v43 = vpop.f32.mrf.mxu0  ;;  %3876 = vmatmul.mubr.bf16.vlgmr.msra.gmra.mxu0 %v7244_v41  ;;  %v5951_v36 = vld [vmem:[%s8196_s3 + $0xa40] ss:$16 sps:$4 sm:$0xff]  }
 0x1a1   :  { %v820_v45 = vpack.c.bf16 %v814_v43, %v814_v43  ;;  %3926 = vmatpush1.bf16.msra.mxu0 %v5892_v37  ;;  %3908 = vmatprep.subr.bf16.mxu1 %v5897_v38  ;;  %v5954_v38 = vld [vmem:[%s8196_s3 + $0x9a0] ss:$16 sps:$4 sm:$0xff]  }
 0x1a2   :  { %v5480_v48 = vpop.f32.mrf.mxu0  ;;  %3927 = vmatprep.subr.bf16.mxu0 %v5900_v42  ;;  %v5959_v42 = vld [vmem:[%s8196_s3 + $0xa24] ss:$16 sps:$4 sm:$0xff]  }
 0x1a3   :  { %821 = vst [vmem:[#allocation2 + $0x18] sm:$0xf] %v820_v45  ;;  %v5962_v45 = vld [vmem:[%s8196_s3 + $0x984] ss:$16 sps:$4 sm:$0xff]  }
 0x1a4   :  { %3909 = vmatpush2.bf16.msra.mxu1 %v5895_v44  ;;  %v817_v50 = vpop.f32.mrf.mxu0 }
 0x1a5   :  { %v927_v52 = vpop.f32.mrf.mxu1  ;;  %3928 = vmatpush1.bf16.msra.mxu0 %v5898_v46  ;;  %3910 = vmatprep.subr.bf16.mxu1 %v5903_v47  ;;  %v5957_v47 = vld [vmem:[%s8196_s3 + $0xa20] ss:$16 sps:$4 sm:$0xff]   ;;  %v5965_v50 = vld [vmem:[%s8196_s3 + $0xa04] ss:$16 sps:$4 sm:$0xff]  }
 0x1a6   :  { %v933_v55 = vpack.c.bf16 %v927_v52, %v927_v52  ;;  %v5481_v56 = vpop.f32.mrf.mxu0  ;;  %3929 = vmatprep.subr.bf16.mxu0 %v5906_v49  ;;  %v5960_v49 = vld [vmem:[%s8196_s3 + $0x980] ss:$16 sps:$4 sm:$0xff]  }
 0x1a7   :  { %v5500_v58 = vpop.f32.mrf.mxu1  ;;  %v5976_v56 = vld [vmem:[%s8196_s3 + $0x944] ss:$16 sps:$4 sm:$0xff]  }
 0x1a8   :  { %934 = vst [vmem:[#allocation2 + $0x1c] sm:$0xf] %v933_v55  ;;  %3911 = vmatpush2.bf16.msra.mxu1 %v5901_v51  ;;  %v5968_v51 = vld [vmem:[%s8196_s3 + $0x964] ss:$16 sps:$4 sm:$0xff]   ;;  %v5969_v58 = vld [vmem:[%s8196_s3 + $0xbe0] ss:$16 sps:$4 sm:$0xff]  }
 0x1a9   :  { %v930_v60 = vpop.f32.mrf.mxu1  ;;  %3930 = vmatpush1.bf16.msra.mxu0 %v5904_v53  ;;  %3912 = vmatprep.subr.bf16.mxu1 %v5909_v54  ;;  %v5963_v53 = vld [vmem:[%s8196_s3 + $0xa00] ss:$16 sps:$4 sm:$0xff]   ;;  %v5971_v55 = vld [vmem:[%s8196_s3 + $0xbe4] ss:$16 sps:$4 sm:$0xff]  }
 0x1aa   :  { %3931 = vmatprep.subr.bf16.mxu0 %v5912_v57  ;;  %v5966_v54 = vld [vmem:[%s8196_s3 + $0x960] ss:$16 sps:$4 sm:$0xff]  }
 0x1ab   :  { %v5501_v1 = vpop.f32.mrf.mxu1  ;;  %v5974_v60 = vld [vmem:[%s8196_s3 + $0x940] ss:$16 sps:$4 sm:$0xff]  }
 0x1ac   :  { %3913 = vmatpush2.bf16.msra.mxu1 %v5907_v59  ;;  %v5980_v1 = vld [vmem:[%s8196_s3 + $0x920] ss:$16 sps:$4 sm:$0xff]  }
 0x1ad   :  { %3932 = vmatpush1.bf16.msra.mxu0 %v5910_v61  ;;  %3914 = vmatprep.subr.bf16.mxu1 %v5915_v62  ;;  %v5979_v61 = vld [vmem:[%s8196_s3 + $0xbc4] ss:$16 sps:$4 sm:$0xff]  }
 0x1ae   :  { %3933 = vmatprep.subr.bf16.mxu0 %v5918_v63  ;;  %v5982_v62 = vld [vmem:[%s8196_s3 + $0x924] ss:$16 sps:$4 sm:$0xff]   ;;  %v5977_v63 = vld [vmem:[%s8196_s3 + $0xbc0] ss:$16 sps:$4 sm:$0xff]  }
 0x1af   :  { %v1390_v31 = vld [vmem:[#allocation2 + $0x18] sm:$0xff] }
 0x1b0   :  { %3915 = vmatpush2.bf16.msra.mxu1 %v5913_v2  ;;  %v7298_v4 = vcombine.low %v1390_v31, %v1390_v31  ;;  %v7300_v7 = vcombine.high %v1390_v31, %v1390_v31  ;;  %v5985_v2 = vld [vmem:[%s8196_s3 + $0xba4] ss:$16 sps:$4 sm:$0xff]  }
 0x1b1   :  { %3934 = vmatpush1.bf16.msra.mxu0 %v5916_v3  ;;  %3966 = vmatprep.subr.bf16.mxu1 %v5923_v5  ;;  %v5988_v3 = vld [vmem:[%s8196_s3 + $0x904] ss:$16 sps:$4 sm:$0xff]   ;;  %v5983_v5 = vld [vmem:[%s8196_s3 + $0xba0] ss:$16 sps:$4 sm:$0xff]  }
 0x1b2   :  { %3916 = vmatprep.mubr.bf16.mxu1 %v7300_v7  ;;  %3935 = vmatprep.subr.bf16.mxu0 %v5926_v6  ;;  %v5986_v6 = vld [vmem:[%s8196_s3 + $0x900] ss:$16 sps:$4 sm:$0xff]   ;;  %v5991_v31 = vld [vmem:[%s8196_s3 + $0xb84] ss:$16 sps:$4 sm:$0xff]  }
 0x1b3   :  { %3917 = vmatmul.mubr.bf16.vlgmr.msra.gmra.mxu1 %v7298_v4 }
 0x1b4   :  { %3967 = vmatpush1.bf16.msra.mxu1 %v5921_v8  ;;  %v5994_v8 = vld [vmem:[%s8196_s3 + $0xec] ss:$16 sps:$4 sm:$0xff]  }
 0x1b5   :  { %3936 = vmatpush1.bf16.msra.mxu0 %v5924_v9  ;;  %3968 = vmatprep.subr.bf16.mxu1 %v5929_v10  ;;  %v5989_v9 = vld [vmem:[%s8196_s3 + $0xb80] ss:$16 sps:$4 sm:$0xff]   ;;  %v5992_v10 = vld [vmem:[%s8196_s3 + $0xe8] ss:$16 sps:$4 sm:$0xff]  }
 0x1b6   :  { %3937 = vmatprep.subr.bf16.mxu0 %v5932_v34 }
 0x1b8   :  { %3969 = vmatpush1.bf16.msra.mxu1 %v5927_v11  ;;  %v5997_v11 = vld [vmem:[%s8196_s3 + $0xb64] ss:$16 sps:$4 sm:$0xff]  }
 0x1b9   :  { %3938 = vmatpush1.bf16.msra.mxu0 %v5930_v12  ;;  %3970 = vmatprep.subr.bf16.mxu1 %v5935_v14  ;;  %v6000_v12 = vld [vmem:[%s8196_s3 + $0xcc] ss:$16 sps:$4 sm:$0xff]  }
 0x1ba   :  { %3939 = vmatprep.subr.bf16.mxu0 %v5938_v15  ;;  %v5995_v15 = vld [vmem:[%s8196_s3 + $0xb60] ss:$16 sps:$4 sm:$0xff]  }
 0x1bc   :  { %3971 = vmatpush1.bf16.msra.mxu1 %v5933_v16 }
 0x1bd   :  { %3940 = vmatpush1.bf16.msra.mxu0 %v5936_v17  ;;  %3972 = vmatprep.subr.bf16.mxu1 %v5941_v18  ;;  %v5998_v17 = vld [vmem:[%s8196_s3 + $0xc8] ss:$16 sps:$4 sm:$0xff]   ;;  %v6003_v18 = vld [vmem:[%s8196_s3 + $0xb44] ss:$16 sps:$4 sm:$0xff]  }
 0x1be   :  { %3941 = vmatprep.subr.bf16.mxu0 %v5944_v19 }
 0x1c0   :  { %3973 = vmatpush1.bf16.msra.mxu1 %v5939_v20  ;;  %v1040_v25 = vpop.f32.mrf.mxu0  ;;  %v6006_v20 = vld [vmem:[%s8196_s3 + $0xac] ss:$16 sps:$4 sm:$0xff]  }
 0x1c1   :  { %v1046_v27 = vpack.c.bf16 %v1040_v25, %v1040_v25  ;;  %3942 = vmatpush2.bf16.msra.mxu0 %v5942_v22  ;;  %3974 = vmatprep.subr.bf16.mxu1 %v5947_v23  ;;  %v6009_v25 = vld [vmem:[%s8196_s3 + $0xb24] ss:$16 sps:$4 sm:$0xff]  }
 0x1c2   :  { %v5520_v32 = vpop.f32.mrf.mxu0  ;;  %3943 = vmatprep.subr.bf16.mxu0 %v5950_v24  ;;  %v6004_v24 = vld [vmem:[%s8196_s3 + $0xa8] ss:$16 sps:$4 sm:$0xff]  }
 0x1c3   :  { %1047 = vst [vmem:[#allocation2 + $0x20] sm:$0xf] %v1046_v27  ;;  %v6007_v32 = vld [vmem:[%s8196_s3 + $0xb20] ss:$16 sps:$4 sm:$0xff]  }
 0x1c4   :  { %3975 = vmatpush1.bf16.msra.mxu1 %v5945_v26  ;;  %v1043_v35 = vpop.f32.mrf.mxu0 }
 0x1c5   :  { %v1153_v37 = vpop.f32.mrf.mxu1  ;;  %3944 = vmatpush2.bf16.msra.mxu0 %v5948_v28  ;;  %3976 = vmatprep.subr.bf16.mxu1 %v5953_v29  ;;  %v6012_v28 = vld [vmem:[%s8196_s3 + $0x8c] ss:$16 sps:$4 sm:$0xff]   ;;  %v6010_v35 = vld [vmem:[%s8196_s3 + $0x88] ss:$16 sps:$4 sm:$0xff]  }
 0x1c6   :  { %v1159_v43 = vpack.c.bf16 %v1153_v37, %v1153_v37  ;;  %v5521_v44 = vpop.f32.mrf.mxu0  ;;  %3945 = vmatprep.subr.bf16.mxu0 %v5956_v33  ;;  %v6018_v37 = vld [vmem:[%s8196_s3 + $0x6c] ss:$16 sps:$4 sm:$0xff]  }
 0x1c7   :  { %v5540_v46 = vpop.f32.mrf.mxu1  ;;  %v6023_v44 = vld [vmem:[%s8196_s3 + $0x2ec] ss:$16 sps:$4 sm:$0xff]  }
 0x1c8   :  { %1160 = vst [vmem:[#allocation2 + $0x24] sm:$0xf] %v1159_v43  ;;  %3977 = vmatpush1.bf16.msra.mxu1 %v5951_v36  ;;  %v6015_v36 = vld [vmem:[%s8196_s3 + $0xb04] ss:$16 sps:$4 sm:$0xff]   ;;  %v6016_v43 = vld [vmem:[%s8196_s3 + $0x68] ss:$16 sps:$4 sm:$0xff]  }
 0x1c9   :  { %v1156_v48 = vpop.f32.mrf.mxu1  ;;  %3946 = vmatpush2.bf16.msra.mxu0 %v5954_v38  ;;  %3978 = vmatprep.subr.bf16.mxu1 %v5959_v42  ;;  %v6013_v42 = vld [vmem:[%s8196_s3 + $0xb00] ss:$16 sps:$4 sm:$0xff]  }
 0x1ca   :  { %3947 = vmatprep.subr.bf16.mxu0 %v5962_v45  ;;  %v6026_v45 = vld [vmem:[%s8196_s3 + $0x4c] ss:$16 sps:$4 sm:$0xff]  }
 0x1cb   :  { %v5541_v52 = vpop.f32.mrf.mxu1 }
 0x1cc   :  { %3979 = vmatpush1.bf16.msra.mxu1 %v5957_v47  ;;  %v6032_v52 = vld [vmem:[%s8196_s3 + $0x2c] ss:$16 sps:$4 sm:$0xff]  }
 0x1cd   :  { %3948 = vmatpush2.bf16.msra.mxu0 %v5960_v49  ;;  %3980 = vmatprep.subr.bf16.mxu1 %v5965_v50  ;;  %v6021_v49 = vld [vmem:[%s8196_s3 + $0x2e8] ss:$16 sps:$4 sm:$0xff]  }
 0x1ce   :  { %3949 = vmatprep.subr.bf16.mxu0 %v5968_v51  ;;  %v6024_v50 = vld [vmem:[%s8196_s3 + $0x48] ss:$16 sps:$4 sm:$0xff]   ;;  %v6029_v51 = vld [vmem:[%s8196_s3 + $0x2cc] ss:$16 sps:$4 sm:$0xff]  }
 0x1cf   :  { %v1391_v57 = vld [vmem:[#allocation2 + $0x20] sm:$0xff] }
 0x1d0   :  { %3981 = vmatpush1.bf16.msra.mxu1 %v5963_v53  ;;  %v7403_v59 = vcombine.high %v1391_v57, %v1391_v57  ;;  %v7445_v34 = vcombine.low %v1391_v57, %v1391_v57  ;;  %v6027_v53 = vld [vmem:[%s8196_s3 + $0x2c8] ss:$16 sps:$4 sm:$0xff]  }
 0x1d1   :  { %3950 = vmatpush2.bf16.msra.mxu0 %v5966_v54  ;;  %3982 = vmatprep.subr.bf16.mxu1 %v5971_v55  ;;  %v6030_v54 = vld [vmem:[%s8196_s3 + $0x28] ss:$16 sps:$4 sm:$0xff]   ;;  %v6035_v55 = vld [vmem:[%s8196_s3 + $0x2ac] ss:$16 sps:$4 sm:$0xff]  }
 0x1d2   :  { %3957 = vmatprep.mubr.bf16.mxu0 %v7403_v59  ;;  %3951 = vmatprep.subr.bf16.mxu0 %v5976_v56  ;;  %v6038_v56 = vld [vmem:[%s8196_s3 + $0xc] ss:$16 sps:$4 sm:$0xff]   ;;  %v6036_v57 = vld [vmem:[%s8196_s3 + $0x8] ss:$16 sps:$4 sm:$0xff]  }
 0x1d4   :  { %3983 = vmatpush2.bf16.msra.mxu1 %v5969_v58  ;;  %v6041_v58 = vld [vmem:[%s8196_s3 + $0x28c] ss:$16 sps:$4 sm:$0xff]  }
 0x1d5   :  { %3952 = vmatpush2.bf16.msra.mxu0 %v5974_v60  ;;  %3984 = vmatprep.subr.bf16.mxu1 %v5979_v61  ;;  %v6044_v60 = vld [vmem:[%s8196_s3 + $0x1ec] ss:$16 sps:$4 sm:$0xff]   ;;  %v6039_v61 = vld [vmem:[%s8196_s3 + $0x288] ss:$16 sps:$4 sm:$0xff]  }
 0x1d6   :  { %3953 = vmatprep.subr.bf16.mxu0 %v5982_v62  ;;  %v6042_v62 = vld [vmem:[%s8196_s3 + $0x1e8] ss:$16 sps:$4 sm:$0xff]  }
 0x1d8   :  { %3985 = vmatpush2.bf16.msra.mxu1 %v5977_v63  ;;  %v6047_v63 = vld [vmem:[%s8196_s3 + $0x26c] ss:$16 sps:$4 sm:$0xff]  }
 0x1d9   :  { %3954 = vmatpush2.bf16.msra.mxu0 %v5980_v1  ;;  %3986 = vmatprep.subr.bf16.mxu1 %v5985_v2  ;;  %v6050_v1 = vld [vmem:[%s8196_s3 + $0x1cc] ss:$16 sps:$4 sm:$0xff]   ;;  %v6045_v2 = vld [vmem:[%s8196_s3 + $0x268] ss:$16 sps:$4 sm:$0xff]  }
 0x1da   :  { %3955 = vmatprep.subr.bf16.mxu0 %v5988_v3  ;;  %v6048_v3 = vld [vmem:[%s8196_s3 + $0x1c8] ss:$16 sps:$4 sm:$0xff]  }
 0x1dc   :  { %3987 = vmatpush2.bf16.msra.mxu1 %v5983_v5  ;;  %v6053_v5 = vld [vmem:[%s8196_s3 + $0x24c] ss:$16 sps:$4 sm:$0xff]  }
 0x1dd   :  { %3956 = vmatpush2.bf16.msra.mxu0 %v5986_v6  ;;  %3988 = vmatprep.subr.bf16.mxu1 %v5991_v31  ;;  %v6056_v6 = vld [vmem:[%s8196_s3 + $0x1ac] ss:$16 sps:$4 sm:$0xff]   ;;  %v6051_v31 = vld [vmem:[%s8196_s3 + $0x248] ss:$16 sps:$4 sm:$0xff]  }
 0x1de   :  { %4007 = vmatprep.subr.bf16.mxu0 %v5994_v8  ;;  %v6054_v8 = vld [vmem:[%s8196_s3 + $0x1a8] ss:$16 sps:$4 sm:$0xff]  }
 0x1e0   :  { %3989 = vmatpush2.bf16.msra.mxu1 %v5989_v9  ;;  %v1266_v14 = vpop.f32.mrf.mxu0  ;;  %3958 = vmatmul.mubr.bf16.vlgmr.msra.gmra.mxu0 %v7445_v34  ;;  %v6059_v9 = vld [vmem:[%s8196_s3 + $0x22c] ss:$16 sps:$4 sm:$0xff]  }
 0x1e1   :  { %v1272_v16 = vpack.c.bf16 %v1266_v14, %v1266_v14  ;;  %4008 = vmatpush1.bf16.msra.mxu0 %v5992_v10  ;;  %4039 = vmatprep.mubr.bf16.mxu0 %v7013_v0  ;;  %v6001_v0 = vld [vmem:[%s8196_s3 + $0xb40] ss:$16 sps:$4 sm:$0xff]   ;;  %v6062_v10 = vld [vmem:[%s8196_s3 + $0x18c] ss:$16 sps:$4 sm:$0xff]  }
 0x1e2   :  { %v5560_v19 = vpop.f32.mrf.mxu0  ;;  %3990 = vmatprep.subr.bf16.mxu1 %v5997_v11  ;;  %4009 = vmatprep.subr.bf16.mxu0 %v6000_v12  ;;  %v6057_v11 = vld [vmem:[%s8196_s3 + $0x228] ss:$16 sps:$4 sm:$0xff]   ;;  %v6065_v14 = vld [vmem:[%s8196_s3 + $0x20c] ss:$16 sps:$4 sm:$0xff]  }
 0x1e3   :  { %1273 = vst [vmem:[#allocation2 + $0x28] sm:$0xf] %v1272_v16  ;;  %v6060_v12 = vld [vmem:[%s8196_s3 + $0x188] ss:$16 sps:$4 sm:$0xff]   ;;  %v6074_v19 = vld [vmem:[%s8196_s3 + $0x14c] ss:$16 sps:$4 sm:$0xff]  }
 0x1e4   :  { %3991 = vmatpush2.bf16.msra.mxu1 %v5995_v15  ;;  %v1269_v22 = vpop.f32.mrf.mxu0  ;;  %v6068_v15 = vld [vmem:[%s8196_s3 + $0x16c] ss:$16 sps:$4 sm:$0xff]   ;;  %v6063_v16 = vld [vmem:[%s8196_s3 + $0x208] ss:$16 sps:$4 sm:$0xff]  }
 0x1e5   :  { %v1379_v23 = vpop.f32.mrf.mxu1  ;;  %4010 = vmatpush1.bf16.msra.mxu0 %v5998_v17  ;;  %3992 = vmatprep.subr.bf16.mxu1 %v6003_v18  ;;  %v6066_v17 = vld [vmem:[%s8196_s3 + $0x168] ss:$16 sps:$4 sm:$0xff]   ;;  %v6071_v18 = vld [vmem:[%s8196_s3 + $0x3ec] ss:$16 sps:$4 sm:$0xff]  }
 0x1e6   :  { %v1385_v26 = vpack.c.bf16 %v1379_v23, %v1379_v23  ;;  %v5561_v27 = vpop.f32.mrf.mxu0  ;;  %4011 = vmatprep.subr.bf16.mxu0 %v6006_v20  ;;  %v6069_v20 = vld [vmem:[%s8196_s3 + $0x3e8] ss:$16 sps:$4 sm:$0xff]   ;;  %v6080_v23 = vld [vmem:[%s8196_s3 + $0x12c] ss:$16 sps:$4 sm:$0xff]  }
 0x1e7   :  { %v5580_v29 = vpop.f32.mrf.mxu1  ;;  %v6072_v22 = vld [vmem:[%s8196_s3 + $0x148] ss:$16 sps:$4 sm:$0xff]   ;;  %v6086_v27 = vld [vmem:[%s8196_s3 + $0x10c] ss:$16 sps:$4 sm:$0xff]  }
 0x1e8   :  { %1386 = vst [vmem:[#allocation2 + $0x2c] sm:$0xf] %v1385_v26  ;;  %3993 = vmatpush2.bf16.msra.mxu1 %v6001_v0  ;;  %v6077_v0 = vld [vmem:[%s8196_s3 + $0x3cc] ss:$16 sps:$4 sm:$0xff]   ;;  %v6084_v29 = vld [vmem:[%s8196_s3 + $0x108] ss:$16 sps:$4 sm:$0xff]  }
 0x1e9   :  { %v1382_v33 = vpop.f32.mrf.mxu1  ;;  %4012 = vmatpush1.bf16.msra.mxu0 %v6004_v24  ;;  %3994 = vmatprep.subr.bf16.mxu1 %v6009_v25  ;;  %v6075_v24 = vld [vmem:[%s8196_s3 + $0x3c8] ss:$16 sps:$4 sm:$0xff]   ;;  %v6083_v26 = vld [vmem:[%s8196_s3 + $0x3ac] ss:$16 sps:$4 sm:$0xff]  }
 0x1ea   :  { %4013 = vmatprep.subr.bf16.mxu0 %v6012_v28  ;;  %v6078_v25 = vld [vmem:[%s8196_s3 + $0x128] ss:$16 sps:$4 sm:$0xff]   ;;  %v6092_v33 = vld [vmem:[%s8196_s3 + $0x4ec] ss:$16 sps:$4 sm:$0xff]  }
 0x1eb   :  { %v5581_v38 = vpop.f32.mrf.mxu1  ;;  %v6081_v28 = vld [vmem:[%s8196_s3 + $0x3a8] ss:$16 sps:$4 sm:$0xff]  }
 0x1ec   :  { %3995 = vmatpush2.bf16.msra.mxu1 %v6007_v32  ;;  %v6089_v32 = vld [vmem:[%s8196_s3 + $0x38c] ss:$16 sps:$4 sm:$0xff]  }
 0x1ed   :  { %4014 = vmatpush1.bf16.msra.mxu0 %v6010_v35  ;;  %3996 = vmatprep.subr.bf16.mxu1 %v6015_v36  ;;  %v6087_v35 = vld [vmem:[%s8196_s3 + $0x388] ss:$16 sps:$4 sm:$0xff]   ;;  %v6098_v38 = vld [vmem:[%s8196_s3 + $0x4cc] ss:$16 sps:$4 sm:$0xff]  }
 0x1ee   :  { %4015 = vmatprep.subr.bf16.mxu0 %v6018_v37  ;;  %v6090_v36 = vld [vmem:[%s8196_s3 + $0x4e8] ss:$16 sps:$4 sm:$0xff]   ;;  %v6095_v37 = vld [vmem:[%s8196_s3 + $0x36c] ss:$16 sps:$4 sm:$0xff]  }
 0x1ef   :  { %v1392_v46 = vld [vmem:[#allocation2 + $0x28] sm:$0xff] }
 0x1f0   :  { %3997 = vmatpush2.bf16.msra.mxu1 %v6013_v42  ;;  %v7503_v47 = vcombine.low %v1392_v46, %v1392_v46  ;;  %v7505_v48 = vcombine.high %v1392_v46, %v1392_v46 }
 0x1f1   :  { %4016 = vmatpush1.bf16.msra.mxu0 %v6016_v43  ;;  %4048 = vmatprep.subr.bf16.mxu1 %v6023_v44  ;;  %v6093_v43 = vld [vmem:[%s8196_s3 + $0x368] ss:$16 sps:$4 sm:$0xff]  }
 0x1f2   :  { %3998 = vmatprep.mubr.bf16.mxu1 %v7505_v48  ;;  %4017 = vmatprep.subr.bf16.mxu0 %v6026_v45  ;;  %v6096_v44 = vld [vmem:[%s8196_s3 + $0x4c8] ss:$16 sps:$4 sm:$0xff]   ;;  %v6101_v45 = vld [vmem:[%s8196_s3 + $0x34c] ss:$16 sps:$4 sm:$0xff]  }
 0x1f3   :  { %3999 = vmatmul.mubr.bf16.vlgmr.msra.gmra.mxu1 %v7503_v47 }
 0x1f4   :  { %4049 = vmatpush1.bf16.msra.mxu1 %v6021_v49  ;;  %4080 = vmatprep.mubr.bf16.mxu1 %v7096_v40  ;;  %v6033_v40 = vld [vmem:[%s8196_s3 + $0x2a8] ss:$16 sps:$4 sm:$0xff]  }
 0x1f5   :  { %4018 = vmatpush1.bf16.msra.mxu0 %v6024_v50  ;;  %4050 = vmatprep.subr.bf16.mxu1 %v6029_v51  ;;  %v6102_v50 = vld [vmem:[%s8196_s3 + $0x4a8] ss:$16 sps:$4 sm:$0xff]   ;;  %v6107_v51 = vld [vmem:[%s8196_s3 + $0x32c] ss:$16 sps:$4 sm:$0xff]  }
 0x1f6   :  { %4019 = vmatprep.subr.bf16.mxu0 %v6032_v52  ;;  %v7678_v52 = vshrl.u32 %v29_v30, 7  ;;  %v6113_v30 = vld [vmem:[%s8196_s3 + $0x30c] ss:$16 sps:$4 sm:$0xff]  }
 0x1f8   :  { %4051 = vmatpush1.bf16.msra.mxu1 %v6027_v53 }
 0x1f9   :  { %4020 = vmatpush1.bf16.msra.mxu0 %v6030_v54  ;;  %4052 = vmatprep.subr.bf16.mxu1 %v6035_v55  ;;  %v6110_v54 = vld [vmem:[%s8196_s3 + $0x48c] ss:$16 sps:$4 sm:$0xff]   ;;  %v6105_v55 = vld [vmem:[%s8196_s3 + $0x328] ss:$16 sps:$4 sm:$0xff]  }
 0x1fa   :  { %4021 = vmatprep.subr.bf16.mxu0 %v6038_v56  ;;  %v6108_v56 = vld [vmem:[%s8196_s3 + $0x488] ss:$16 sps:$4 sm:$0xff]  }
 0x1fc   :  { %4053 = vmatpush1.bf16.msra.mxu1 %v6033_v40  ;;  %v1781_v40 = vsub.s32 0, %v7678_v52 }
 0x1fd   :  { %4022 = vmatpush1.bf16.msra.mxu0 %v6036_v57  ;;  %4054 = vmatprep.subr.bf16.mxu1 %v6041_v58  ;;  %v6116_v57 = vld [vmem:[%s8196_s3 + $0x46c] ss:$16 sps:$4 sm:$0xff]   ;;  %v7699_v58 = vld [vmem:[%s8197_s4] sm:$0xf]  ;;  %s6367_s4 = smov [#allocation3]  }
 0x1fe   :  { %4023 = vmatprep.subr.bf16.mxu0 %v6044_v60  ;;  %v1785_v60 = vsub.s32 1, %v7678_v52  ;;  %s4621_s12 = sshll.u32 %s6367_s4, 4  ;;  %s4622_s12 = int_to_ptr.vmem [resolvable:$true] %s4621_s12 }
 0x1ff   :  { %p6335_p1 = scmp.lt.s32.totalorder %s4622_s12, %s4622_s12 }
 0x200   :  { %4055 = vmatpush1.bf16.msra.mxu1 %v6039_v61  ;;  %v6111_v61 = vld [vmem:[%s8196_s3 + $0x308] ss:$16 sps:$4 sm:$0xff]  }
 0x201   :  { %4024 = vmatpush2.bf16.msra.mxu0 %v6042_v62  ;;  %4056 = vmatprep.subr.bf16.mxu1 %v6047_v63  ;;  %v6114_v62 = vld [vmem:[%s8196_s3 + $0x468] ss:$16 sps:$4 sm:$0xff]   ;;  %v6119_v63 = vld [vmem:[%s8196_s3 + $0x6ec] ss:$16 sps:$4 sm:$0xff]  }
 0x202   :  { %4025 = vmatprep.subr.bf16.mxu0 %v6050_v1  ;;  %v1782_v1 = vrot.slane %v7699_v58, %v1781_v40  ;;  %v6182_v40 = vld [vmem:[%s8196_s3 + $0x50c] ss:$16 sps:$4 sm:$0xff]  }
 0x204   :  { %4057 = vmatpush1.bf16.msra.mxu1 %v6045_v2  ;;  %v6122_v2 = vld [vmem:[%s8196_s3 + $0x44c] ss:$16 sps:$4 sm:$0xff]  }
 0x205   :  { %4026 = vmatpush2.bf16.msra.mxu0 %v6048_v3  ;;  %4058 = vmatprep.subr.bf16.mxu1 %v6053_v5  ;;  %v1786_v3 = vrot.slane %v7699_v58, %v1785_v60  ;;  %v6117_v5 = vld [vmem:[%s8196_s3 + $0x6e8] ss:$16 sps:$4 sm:$0xff]  }
 0x206   :  { %4027 = vmatprep.subr.bf16.mxu0 %v6056_v6  ;;  %v6120_v6 = vld [vmem:[%s8196_s3 + $0x448] ss:$16 sps:$4 sm:$0xff]  }
 0x207   :  { %v6180_v60 = vld [vmem:[%s8196_s3 + $0x508] ss:$16 sps:$4 sm:$0xff]  }
 0x208   :  { %4059 = vmatpush1.bf16.msra.mxu1 %v6051_v31  ;;  %v6125_v31 = vld [vmem:[%s8196_s3 + $0x6cc] ss:$16 sps:$4 sm:$0xff]  }
 0x209   :  { %4028 = vmatpush2.bf16.msra.mxu0 %v6054_v8  ;;  %4060 = vmatprep.subr.bf16.mxu1 %v6059_v9  ;;  %v6128_v9 = vld [vmem:[%s8196_s3 + $0x42c] ss:$16 sps:$4 sm:$0xff]  }
 0x20a   :  { %4029 = vmatprep.subr.bf16.mxu0 %v6062_v10 }
 0x20c   :  { %4061 = vmatpush1.bf16.msra.mxu1 %v6057_v11 }
 0x20d   :  { %4030 = vmatpush2.bf16.msra.mxu0 %v6060_v12  ;;  %4062 = vmatprep.subr.bf16.mxu1 %v6065_v14  ;;  %v6123_v14 = vld [vmem:[%s8196_s3 + $0x6c8] ss:$16 sps:$4 sm:$0xff]  }
 0x20e   :  { %4031 = vmatprep.subr.bf16.mxu0 %v6068_v15 }
 0x210   :  { %4063 = vmatpush1.bf16.msra.mxu1 %v6063_v16  ;;  %v6126_v16 = vld [vmem:[%s8196_s3 + $0x428] ss:$16 sps:$4 sm:$0xff]  }
 0x211   :  { %4032 = vmatpush2.bf16.msra.mxu0 %v6066_v17  ;;  %4064 = vmatprep.subr.bf16.mxu1 %v6071_v18 }
 0x212   :  { %4033 = vmatprep.subr.bf16.mxu0 %v6074_v19  ;;  %v6129_v19 = vld [vmem:[%s8196_s3 + $0x6a8] ss:$16 sps:$4 sm:$0xff]  }
 0x214   :  { %4065 = vmatpush2.bf16.msra.mxu1 %v6069_v20 }
 0x215   :  { %4034 = vmatpush2.bf16.msra.mxu0 %v6072_v22  ;;  %4066 = vmatprep.subr.bf16.mxu1 %v6077_v0  ;;  %v6132_v22 = vld [vmem:[%s8196_s3 + $0x408] ss:$16 sps:$4 sm:$0xff]   ;;  %v6137_v0 = vld [vmem:[%s8196_s3 + $0x68c] ss:$16 sps:$4 sm:$0xff]  }
 0x216   :  { %4035 = vmatprep.subr.bf16.mxu0 %v6080_v23  ;;  %v6140_v23 = vld [vmem:[%s8196_s3 + $0x5ec] ss:$16 sps:$4 sm:$0xff]  }
 0x218   :  { %4067 = vmatpush2.bf16.msra.mxu1 %v6075_v24  ;;  %v6135_v24 = vld [vmem:[%s8196_s3 + $0x688] ss:$16 sps:$4 sm:$0xff]  }
 0x219   :  { %4036 = vmatpush2.bf16.msra.mxu0 %v6078_v25  ;;  %4068 = vmatprep.subr.bf16.mxu1 %v6083_v26  ;;  %v6138_v25 = vld [vmem:[%s8196_s3 + $0x5e8] ss:$16 sps:$4 sm:$0xff]   ;;  %v6143_v26 = vld [vmem:[%s8196_s3 + $0x66c] ss:$16 sps:$4 sm:$0xff]  }
 0x21a   :  { %4037 = vmatprep.subr.bf16.mxu0 %v6086_v27  ;;  %v6146_v27 = vld [vmem:[%s8196_s3 + $0x5cc] ss:$16 sps:$4 sm:$0xff]  }
 0x21c   :  { %4069 = vmatpush2.bf16.msra.mxu1 %v6081_v28  ;;  %v6141_v28 = vld [vmem:[%s8196_s3 + $0x668] ss:$16 sps:$4 sm:$0xff]  }
 0x21d   :  { %4038 = vmatpush2.bf16.msra.mxu0 %v6084_v29  ;;  %4070 = vmatprep.subr.bf16.mxu1 %v6089_v32  ;;  %v6144_v29 = vld [vmem:[%s8196_s3 + $0x5c8] ss:$16 sps:$4 sm:$0xff]   ;;  %v6149_v32 = vld [vmem:[%s8196_s3 + $0x64c] ss:$16 sps:$4 sm:$0xff]  }
 0x21e   :  { %4089 = vmatprep.subr.bf16.mxu0 %v6092_v33  ;;  %v6152_v33 = vld [vmem:[%s8196_s3 + $0x5ac] ss:$16 sps:$4 sm:$0xff]  }
 0x220   :  { %4071 = vmatpush2.bf16.msra.mxu1 %v6087_v35  ;;  %v3795_v42 = vpop.f32.mrf.mxu0  ;;  %4040 = vmatmul.mubr.bf16.vlgmr.msra.gmra.mxu0 %v7058_v13  ;;  %v6104_v13 = vld [vmem:[%s8196_s3 + $0x4ac] ss:$16 sps:$4 sm:$0xff]   ;;  %v6147_v35 = vld [vmem:[%s8196_s3 + $0x648] ss:$16 sps:$4 sm:$0xff]  }
 0x221   :  { %4090 = vmatpush1.bf16.msra.mxu0 %v6090_v36  ;;  %4121 = vmatprep.mubr.bf16.mxu0 %v7199_v21  ;;  %v6099_v21 = vld [vmem:[%s8196_s3 + $0x348] ss:$16 sps:$4 sm:$0xff]   ;;  %v3796_v8 = vadd.f32 %v3795_v42, %v1782_v1 }
 0x222   :  { %v3797_v46 = vpop.f32.mrf.mxu0  ;;  %4072 = vmatprep.subr.bf16.mxu1 %v6095_v37  ;;  %4091 = vmatprep.subr.bf16.mxu0 %v6098_v38  ;;  %v6150_v36 = vld [vmem:[%s8196_s3 + $0x5a8] ss:$16 sps:$4 sm:$0xff]   ;;  %v6155_v37 = vld [vmem:[%s8196_s3 + $0x62c] ss:$16 sps:$4 sm:$0xff]  }
 0x223   :  { %v3798_v11 = vadd.f32 %v3797_v46, %v1786_v3  ;;  %v6158_v38 = vld [vmem:[%s8196_s3 + $0x58c] ss:$16 sps:$4 sm:$0xff]   ;;  %v6153_v42 = vld [vmem:[%s8196_s3 + $0x628] ss:$16 sps:$4 sm:$0xff]  }
 0x224   :  { %4073 = vmatpush2.bf16.msra.mxu1 %v6093_v43  ;;  %v3799_v49 = vpop.f32.mrf.mxu0  ;;  %v6156_v43 = vld [vmem:[%s8196_s3 + $0x588] ss:$16 sps:$4 sm:$0xff]   ;;  %v6194_v3 = vld [vmem:[%s8196_s3 + $0x8cc] ss:$16 sps:$4 sm:$0xff]  }
 0x225   :  { %4092 = vmatpush1.bf16.msra.mxu0 %v6096_v44  ;;  %4074 = vmatprep.subr.bf16.mxu1 %v6101_v45  ;;  %v6161_v44 = vld [vmem:[%s8196_s3 + $0x60c] ss:$16 sps:$4 sm:$0xff]   ;;  %v6159_v46 = vld [vmem:[%s8196_s3 + $0x608] ss:$16 sps:$4 sm:$0xff]  }
 0x226   :  { %v3800_v53 = vpop.f32.mrf.mxu0  ;;  %4093 = vmatprep.subr.bf16.mxu0 %v6104_v13  ;;  %v6164_v45 = vld [vmem:[%s8196_s3 + $0x56c] ss:$16 sps:$4 sm:$0xff]   ;;  %v6162_v13 = vld [vmem:[%s8196_s3 + $0x568] ss:$16 sps:$4 sm:$0xff]  }
 0x227   :  { %v6167_v49 = vld [vmem:[%s8196_s3 + $0x7ec] ss:$16 sps:$4 sm:$0xff]   ;;  %v6186_v1 = vld [vmem:[%s8196_s3 + $0x8e8] ss:$16 sps:$4 sm:$0xff]  }
 0x228   :  { %4075 = vmatpush2.bf16.msra.mxu1 %v6099_v21  ;;  %v6170_v21 = vld [vmem:[%s8196_s3 + $0x54c] ss:$16 sps:$4 sm:$0xff]  }
 0x229   :  { %4094 = vmatpush1.bf16.msra.mxu0 %v6102_v50  ;;  %4076 = vmatprep.subr.bf16.mxu1 %v6107_v51  ;;  %v6165_v50 = vld [vmem:[%s8196_s3 + $0x7e8] ss:$16 sps:$4 sm:$0xff]   ;;  %v6173_v53 = vld [vmem:[%s8196_s3 + $0x7cc] ss:$16 sps:$4 sm:$0xff]  }
 0x22a   :  { %4095 = vmatprep.subr.bf16.mxu0 %v6110_v54  ;;  %v6168_v51 = vld [vmem:[%s8196_s3 + $0x548] ss:$16 sps:$4 sm:$0xff]   ;;  %v6176_v54 = vld [vmem:[%s8196_s3 + $0x52c] ss:$16 sps:$4 sm:$0xff]  }
 0x22c   :  { %4077 = vmatpush2.bf16.msra.mxu1 %v6105_v55  ;;  %v6171_v55 = vld [vmem:[%s8196_s3 + $0x7c8] ss:$16 sps:$4 sm:$0xff]  }
 0x22d   :  { %4096 = vmatpush1.bf16.msra.mxu0 %v6108_v56  ;;  %4078 = vmatprep.subr.bf16.mxu1 %v6113_v30  ;;  %v6174_v56 = vld [vmem:[%s8196_s3 + $0x528] ss:$16 sps:$4 sm:$0xff]   ;;  %v6179_v30 = vld [vmem:[%s8196_s3 + $0x7ac] ss:$16 sps:$4 sm:$0xff]  }
 0x22e   :  { %4097 = vmatprep.subr.bf16.mxu0 %v6116_v57  ;;  %v6177_v57 = vld [vmem:[%s8196_s3 + $0x7a8] ss:$16 sps:$4 sm:$0xff]  }
 0x230   :  { %4079 = vmatpush2.bf16.msra.mxu1 %v6111_v61  ;;  %v6185_v61 = vld [vmem:[%s8196_s3 + $0x78c] ss:$16 sps:$4 sm:$0xff]  }
 0x231   :  { %4098 = vmatpush1.bf16.msra.mxu0 %v6114_v62  ;;  %4130 = vmatprep.subr.bf16.mxu1 %v6119_v63  ;;  %v6188_v62 = vld [vmem:[%s8196_s3 + $0x8ec] ss:$16 sps:$4 sm:$0xff]   ;;  %v6183_v63 = vld [vmem:[%s8196_s3 + $0x788] ss:$16 sps:$4 sm:$0xff]  }
 0x232   :  { %4099 = vmatprep.subr.bf16.mxu0 %v6122_v2  ;;  %v6191_v2 = vld [vmem:[%s8196_s3 + $0x76c] ss:$16 sps:$4 sm:$0xff]  }
 0x233   :  { %4081 = vmatmul.mubr.bf16.vlgmr.msra.gmra.mxu1 %v7094_v39  ;;  %v3836_v10 = vpop.f32.mrf.mxu1  ;;  %v6131_v39 = vld [vmem:[%s8196_s3 + $0x6ac] ss:$16 sps:$4 sm:$0xff]  }
 0x234   :  { %v7729_v12 = vadd.f32 %v3836_v10, %v3796_v8  ;;  %4131 = vmatpush1.bf16.msra.mxu1 %v6117_v5  ;;  %4162 = vmatprep.mubr.bf16.mxu1 %v7300_v7  ;;  %v6134_v7 = vld [vmem:[%s8196_s3 + $0x40c] ss:$16 sps:$4 sm:$0xff]   ;;  %v6192_v8 = vld [vmem:[%s8196_s3 + $0x8c8] ss:$16 sps:$4 sm:$0xff]  }
 0x235   :  { %v3838_v15 = vpop.f32.mrf.mxu1  ;;  %4100 = vmatpush1.bf16.msra.mxu0 %v6120_v6  ;;  %4132 = vmatprep.subr.bf16.mxu1 %v6125_v31  ;;  %v6189_v6 = vld [vmem:[%s8196_s3 + $0x768] ss:$16 sps:$4 sm:$0xff]  }
 0x236   :  { %v7741_v17 = vadd.f32 %v3838_v15, %v3798_v11  ;;  %4101 = vmatprep.subr.bf16.mxu0 %v6128_v9  ;;  %v6197_v9 = vld [vmem:[%s8196_s3 + $0x74c] ss:$16 sps:$4 sm:$0xff]  }
 0x237   :  { %v3840_v18 = vpop.f32.mrf.mxu1  ;;  %v6203_v15 = vld [vmem:[%s8196_s3 + $0x72c] ss:$16 sps:$4 sm:$0xff]  }
 0x238   :  { %4133 = vmatpush1.bf16.msra.mxu1 %v6123_v14  ;;  %v6198_v14 = vld [vmem:[%s8196_s3 + $0x8a8] ss:$16 sps:$4 sm:$0xff]   ;;  %v6209_v18 = vld [vmem:[%s8196_s3 + $0x70c] ss:$16 sps:$4 sm:$0xff]  }
 0x239   :  { %v3841_v20 = vpop.f32.mrf.mxu1  ;;  %4102 = vmatpush1.bf16.msra.mxu0 %v6126_v16  ;;  %4134 = vmatprep.subr.bf16.mxu1 %v6131_v39  ;;  %v6206_v39 = vld [vmem:[%s8196_s3 + $0x88c] ss:$16 sps:$4 sm:$0xff]  }
 0x23a   :  { %4103 = vmatprep.subr.bf16.mxu0 %v6134_v7  ;;  %v6204_v7 = vld [vmem:[%s8196_s3 + $0x888] ss:$16 sps:$4 sm:$0xff]  }
 0x23b   :  { %v6207_v20 = vld [vmem:[%s8196_s3 + $0x708] ss:$16 sps:$4 sm:$0xff]  }
 0x23c   :  { %4135 = vmatpush1.bf16.msra.mxu1 %v6129_v19  ;;  %v6212_v19 = vld [vmem:[%s8196_s3 + $0x86c] ss:$16 sps:$4 sm:$0xff]  }
 0x23d   :  { %4104 = vmatpush1.bf16.msra.mxu0 %v6132_v22  ;;  %4136 = vmatprep.subr.bf16.mxu1 %v6137_v0  ;;  %v6210_v22 = vld [vmem:[%s8196_s3 + $0x868] ss:$16 sps:$4 sm:$0xff]   ;;  %v6215_v0 = vld [vmem:[%s8196_s3 + $0xaec] ss:$16 sps:$4 sm:$0xff]  }
 0x23e   :  { %4105 = vmatprep.subr.bf16.mxu0 %v6140_v23  ;;  %v6218_v23 = vld [vmem:[%s8196_s3 + $0x84c] ss:$16 sps:$4 sm:$0xff]  }
 0x240   :  { %4137 = vmatpush1.bf16.msra.mxu1 %v6135_v24  ;;  %v6213_v24 = vld [vmem:[%s8196_s3 + $0xae8] ss:$16 sps:$4 sm:$0xff]  }
 0x241   :  { %4106 = vmatpush2.bf16.msra.mxu0 %v6138_v25  ;;  %4138 = vmatprep.subr.bf16.mxu1 %v6143_v26  ;;  %v6216_v25 = vld [vmem:[%s8196_s3 + $0x848] ss:$16 sps:$4 sm:$0xff]   ;;  %v6221_v26 = vld [vmem:[%s8196_s3 + $0xacc] ss:$16 sps:$4 sm:$0xff]  }
 0x242   :  { %4107 = vmatprep.subr.bf16.mxu0 %v6146_v27  ;;  %v6224_v27 = vld [vmem:[%s8196_s3 + $0x82c] ss:$16 sps:$4 sm:$0xff]  }
 0x244   :  { %4139 = vmatpush1.bf16.msra.mxu1 %v6141_v28 }
 0x245   :  { %4108 = vmatpush2.bf16.msra.mxu0 %v6144_v29  ;;  %4140 = vmatprep.subr.bf16.mxu1 %v6149_v32  ;;  %v6219_v32 = vld [vmem:[%s8196_s3 + $0xac8] ss:$16 sps:$4 sm:$0xff]  }
 0x246   :  { %4109 = vmatprep.subr.bf16.mxu0 %v6152_v33 }
 0x248   :  { %4141 = vmatpush1.bf16.msra.mxu1 %v6147_v35  ;;  %v6222_v35 = vld [vmem:[%s8196_s3 + $0x828] ss:$16 sps:$4 sm:$0xff]  }
 0x249   :  { %4110 = vmatpush2.bf16.msra.mxu0 %v6150_v36  ;;  %4142 = vmatprep.subr.bf16.mxu1 %v6155_v37  ;;  %v6225_v37 = vld [vmem:[%s8196_s3 + $0xaa8] ss:$16 sps:$4 sm:$0xff]  }
 0x24a   :  { %4111 = vmatprep.subr.bf16.mxu0 %v6158_v38 }
 0x24c   :  { %4143 = vmatpush1.bf16.msra.mxu1 %v6153_v42  ;;  %v6228_v42 = vld [vmem:[%s8196_s3 + $0x808] ss:$16 sps:$4 sm:$0xff]  }
 0x24d   :  { %4112 = vmatpush2.bf16.msra.mxu0 %v6156_v43  ;;  %4144 = vmatprep.subr.bf16.mxu1 %v6161_v44  ;;  %v6233_v43 = vld [vmem:[%s8196_s3 + $0xa8c] ss:$16 sps:$4 sm:$0xff]  }
 0x24e   :  { %4113 = vmatprep.subr.bf16.mxu0 %v6164_v45  ;;  %v6236_v44 = vld [vmem:[%s8196_s3 + $0x9ec] ss:$16 sps:$4 sm:$0xff]   ;;  %v6231_v45 = vld [vmem:[%s8196_s3 + $0xa88] ss:$16 sps:$4 sm:$0xff]  }
 0x250   :  { %4145 = vmatpush1.bf16.msra.mxu1 %v6159_v46  ;;  %v6234_v46 = vld [vmem:[%s8196_s3 + $0x9e8] ss:$16 sps:$4 sm:$0xff]  }
 0x251   :  { %4114 = vmatpush2.bf16.msra.mxu0 %v6162_v13  ;;  %4146 = vmatprep.subr.bf16.mxu1 %v6167_v49  ;;  %v6239_v13 = vld [vmem:[%s8196_s3 + $0xa6c] ss:$16 sps:$4 sm:$0xff]  }
 0x252   :  { %4115 = vmatprep.subr.bf16.mxu0 %v6170_v21  ;;  %v6242_v49 = vld [vmem:[%s8196_s3 + $0x9cc] ss:$16 sps:$4 sm:$0xff]   ;;  %v6237_v21 = vld [vmem:[%s8196_s3 + $0xa68] ss:$16 sps:$4 sm:$0xff]  }
 0x254   :  { %4147 = vmatpush2.bf16.msra.mxu1 %v6165_v50  ;;  %v6240_v50 = vld [vmem:[%s8196_s3 + $0x9c8] ss:$16 sps:$4 sm:$0xff]  }
 0x255   :  { %4116 = vmatpush2.bf16.msra.mxu0 %v6168_v51  ;;  %4148 = vmatprep.subr.bf16.mxu1 %v6173_v53  ;;  %v6245_v51 = vld [vmem:[%s8196_s3 + $0xa4c] ss:$16 sps:$4 sm:$0xff]  }
 0x256   :  { %4117 = vmatprep.subr.bf16.mxu0 %v6176_v54  ;;  %v6248_v53 = vld [vmem:[%s8196_s3 + $0x9ac] ss:$16 sps:$4 sm:$0xff]   ;;  %v6243_v54 = vld [vmem:[%s8196_s3 + $0xa48] ss:$16 sps:$4 sm:$0xff]  }
 0x258   :  { %4149 = vmatpush2.bf16.msra.mxu1 %v6171_v55  ;;  %v6246_v55 = vld [vmem:[%s8196_s3 + $0x9a8] ss:$16 sps:$4 sm:$0xff]  }
 0x259   :  { %4118 = vmatpush2.bf16.msra.mxu0 %v6174_v56  ;;  %4150 = vmatprep.subr.bf16.mxu1 %v6179_v30  ;;  %v6251_v56 = vld [vmem:[%s8196_s3 + $0xa2c] ss:$16 sps:$4 sm:$0xff]  }
 0x25a   :  { %4119 = vmatprep.subr.bf16.mxu0 %v6182_v40  ;;  %v6254_v30 = vld [vmem:[%s8196_s3 + $0x98c] ss:$16 sps:$4 sm:$0xff]   ;;  %v6249_v40 = vld [vmem:[%s8196_s3 + $0xa28] ss:$16 sps:$4 sm:$0xff]  }
 0x25c   :  { %4151 = vmatpush2.bf16.msra.mxu1 %v6177_v57  ;;  %v6252_v57 = vld [vmem:[%s8196_s3 + $0x988] ss:$16 sps:$4 sm:$0xff]  }
 0x25d   :  { %4120 = vmatpush2.bf16.msra.mxu0 %v6180_v60  ;;  %4152 = vmatprep.subr.bf16.mxu1 %v6185_v61  ;;  %v6257_v60 = vld [vmem:[%s8196_s3 + $0xa0c] ss:$16 sps:$4 sm:$0xff]  }
 0x25e   :  { %4171 = vmatprep.subr.bf16.mxu0 %v6188_v62  ;;  %v6260_v61 = vld [vmem:[%s8196_s3 + $0x96c] ss:$16 sps:$4 sm:$0xff]   ;;  %v6255_v62 = vld [vmem:[%s8196_s3 + $0xa08] ss:$16 sps:$4 sm:$0xff]  }
 0x260   :  { %4153 = vmatpush2.bf16.msra.mxu1 %v6183_v63  ;;  %v3877_v5 = vpop.f32.mrf.mxu0  ;;  %4122 = vmatmul.mubr.bf16.vlgmr.msra.gmra.mxu0 %v7244_v41  ;;  %v6200_v41 = vld [vmem:[%s8196_s3 + $0x8ac] ss:$16 sps:$4 sm:$0xff]   ;;  %v6258_v63 = vld [vmem:[%s8196_s3 + $0x968] ss:$16 sps:$4 sm:$0xff]  }
 0x261   :  { %v3878_v31 = vadd.f32 %v3877_v5, %v7729_v12  ;;  %4172 = vmatpush1.bf16.msra.mxu0 %v6186_v1  ;;  %4203 = vmatprep.mubr.bf16.mxu0 %v7403_v59  ;;  %v6195_v12 = vld [vmem:[%s8196_s3 + $0x748] ss:$16 sps:$4 sm:$0xff]   ;;  %v6263_v1 = vld [vmem:[%s8196_s3 + $0xbec] ss:$16 sps:$4 sm:$0xff]  }
 0x262   :  { %v3879_v10 = vpop.f32.mrf.mxu0  ;;  %4154 = vmatprep.subr.bf16.mxu1 %v6191_v2  ;;  %4173 = vmatprep.subr.bf16.mxu0 %v6194_v3  ;;  %v6266_v2 = vld [vmem:[%s8196_s3 + $0x94c] ss:$16 sps:$4 sm:$0xff]   ;;  %v6261_v3 = vld [vmem:[%s8196_s3 + $0xbe8] ss:$16 sps:$4 sm:$0xff]  }
 0x263   :  { %v7882_v11 = vadd.f32 %v3879_v10, %v7741_v17  ;;  %v6201_v17 = vld [vmem:[%s8196_s3 + $0x728] ss:$16 sps:$4 sm:$0xff]   ;;  %v6275_v10 = vld [vmem:[%s8196_s3 + $0xbac] ss:$16 sps:$4 sm:$0xff]  }
 0x264   :  { %4155 = vmatpush2.bf16.msra.mxu1 %v6189_v6  ;;  %v3881_v59 = vpop.f32.mrf.mxu0  ;;  %v6264_v5 = vld [vmem:[%s8196_s3 + $0x948] ss:$16 sps:$4 sm:$0xff]   ;;  %v6269_v6 = vld [vmem:[%s8196_s3 + $0xbcc] ss:$16 sps:$4 sm:$0xff]  }
 0x265   :  { %4174 = vmatpush1.bf16.msra.mxu0 %v6192_v8  ;;  %4156 = vmatprep.subr.bf16.mxu1 %v6197_v9  ;;  %v6267_v8 = vld [vmem:[%s8196_s3 + $0xbc8] ss:$16 sps:$4 sm:$0xff]  }
 0x266   :  { %v3882_v16 = vpop.f32.mrf.mxu0  ;;  %4175 = vmatprep.subr.bf16.mxu0 %v6200_v41  ;;  %v6270_v9 = vld [vmem:[%s8196_s3 + $0x928] ss:$16 sps:$4 sm:$0xff]   ;;  %v6278_v41 = vld [vmem:[%s8196_s3 + $0x90c] ss:$16 sps:$4 sm:$0xff]  }
 0x267   :  { %v6273_v59 = vld [vmem:[%s8196_s3 + $0xba8] ss:$16 sps:$4 sm:$0xff]  }
 0x268   :  { %4157 = vmatpush2.bf16.msra.mxu1 %v6195_v12  ;;  %v6276_v12 = vld [vmem:[%s8196_s3 + $0x908] ss:$16 sps:$4 sm:$0xff]  }
 0x269   :  { %4176 = vmatpush1.bf16.msra.mxu0 %v6198_v14  ;;  %4158 = vmatprep.subr.bf16.mxu1 %v6203_v15  ;;  %v6281_v14 = vld [vmem:[%s8196_s3 + $0xb8c] ss:$16 sps:$4 sm:$0xff]   ;;  %v6279_v16 = vld [vmem:[%s8196_s3 + $0xb88] ss:$16 sps:$4 sm:$0xff]  }
 0x26a   :  { %4177 = vmatprep.subr.bf16.mxu0 %v6206_v39  ;;  %v6282_v15 = vld [vmem:[%s8198_s5 + $0x78] sm:$0xff]  }
 0x26b   :  { %v6283_v39 = vld [vmem:[%s8198_s5 + $0x38] sm:$0xff]  }
 0x26c   :  { %4159 = vmatpush2.bf16.msra.mxu1 %v6201_v17  ;;  %v6286_v17 = vld [vmem:[%s8196_s3 + $0xb6c] ss:$16 sps:$4 sm:$0xff]  }
 0x26d   :  { %4178 = vmatpush1.bf16.msra.mxu0 %v6204_v7  ;;  %4160 = vmatprep.subr.bf16.mxu1 %v6209_v18  ;;  %v6287_v7 = vld [vmem:[%s8198_s5 + $0x70] sm:$0xff]  }
 0x26e   :  { %4179 = vmatprep.subr.bf16.mxu0 %v6212_v19  ;;  %v6284_v19 = vld [vmem:[%s8196_s3 + $0xb68] ss:$16 sps:$4 sm:$0xff]  }
 0x270   :  { %4161 = vmatpush2.bf16.msra.mxu1 %v6207_v20  ;;  %v6288_v20 = vld [vmem:[%s8198_s5 + $0x30] sm:$0xff]  }
 0x271   :  { %4180 = vmatpush1.bf16.msra.mxu0 %v6210_v22  ;;  %4212 = vmatprep.subr.bf16.mxu1 %v6215_v0  ;;  %v6291_v22 = vld [vmem:[%s8196_s3 + $0xb4c] ss:$16 sps:$4 sm:$0xff]  }
 0x272   :  { %4181 = vmatprep.subr.bf16.mxu0 %v6218_v23 }
 0x273   :  { %4163 = vmatmul.mubr.bf16.vlgmr.msra.gmra.mxu1 %v7298_v4  ;;  %v3918_v28 = vpop.f32.mrf.mxu1  ;;  %v6227_v4 = vld [vmem:[%s8196_s3 + $0xaac] ss:$16 sps:$4 sm:$0xff]  }
 0x274   :  { %v7933_v29 = vadd.f32 %v3918_v28, %v3878_v31  ;;  %4213 = vmatpush1.bf16.msra.mxu1 %v6213_v24  ;;  %4244 = vmatprep.mubr.bf16.mxu1 %v7505_v48  ;;  %v6230_v48 = vld [vmem:[%s8196_s3 + $0x80c] ss:$16 sps:$4 sm:$0xff]   ;;  %v6289_v24 = vld [vmem:[%s8196_s3 + $0xb48] ss:$16 sps:$4 sm:$0xff]   ;;  %v6297_v28 = vld [vmem:[%s8198_s5 + $0x60] sm:$0xff]  }
 0x275   :  { %v7939_v33 = vpop.f32.mrf.mxu1  ;;  %4182 = vmatpush1.bf16.msra.mxu0 %v6216_v25  ;;  %4214 = vmatprep.subr.bf16.mxu1 %v6221_v26  ;;  %v6272_v31 = vld [vmem:[%s8196_s3 + $0x92c] ss:$16 sps:$4 sm:$0xff]  }
 0x276   :  { %4183 = vmatprep.subr.bf16.mxu0 %v6224_v27  ;;  %v6293_v25 = vld [vmem:[%s8198_s5 + $0x28] sm:$0xff]  }
 0x277   :  { %v3922_v36 = vpop.f32.mrf.mxu1  ;;  %v6296_v26 = vld [vmem:[%s8196_s3 + $0xb2c] ss:$16 sps:$4 sm:$0xff]  }
 0x278   :  { %4215 = vmatpush1.bf16.msra.mxu1 %v6219_v32  ;;  %v6294_v32 = vld [vmem:[%s8196_s3 + $0xb28] ss:$16 sps:$4 sm:$0xff]  }
 0x279   :  { %v3923_v38 = vpop.f32.mrf.mxu1  ;;  %4184 = vmatpush1.bf16.msra.mxu0 %v6222_v35  ;;  %4216 = vmatprep.subr.bf16.mxu1 %v6227_v4  ;;  %v6298_v35 = vld [vmem:[%s8198_s5 + $0x20] sm:$0xff]   ;;  %v6301_v4 = vld [vmem:[%s8196_s3 + $0xb0c] ss:$16 sps:$4 sm:$0xff]   ;;  %v6299_v36 = vld [vmem:[%s8196_s3 + $0xb08] ss:$16 sps:$4 sm:$0xff]  }
 0x27a   :  { %4185 = vmatprep.subr.bf16.mxu0 %v6230_v48  ;;  %v6302_v48 = vld [vmem:[%s8198_s5 + $0x58] sm:$0xff]   ;;  %v6304_v38 = vld [vmem:[%s8198_s5 + $0x50] sm:$0xff]  }
 0x27c   :  { %4217 = vmatpush1.bf16.msra.mxu1 %v6225_v37  ;;  %v6303_v37 = vld [vmem:[%s8198_s5 + $0x18] sm:$0xff]  }
 0x27d   :  { %4186 = vmatpush1.bf16.msra.mxu0 %v6228_v42  ;;  %4218 = vmatprep.subr.bf16.mxu1 %v6233_v43  ;;  %v6305_v42 = vld [vmem:[%s8198_s5 + $0x10] sm:$0xff]   ;;  %v3921_v43 = vadd.f32 %v7939_v33, %v7882_v11  ;;  %v6308_v11 = vld [vmem:[%s8198_s5 + $0x40] sm:$0xff]  }
 0x27e   :  { %4187 = vmatprep.subr.bf16.mxu0 %v6236_v44  ;;  %v6306_v44 = vld [vmem:[%s8198_s5 + $0x48] sm:$0xff]  }
 0x280   :  { %4219 = vmatpush1.bf16.msra.mxu1 %v6231_v45 }
 0x281   :  { %4188 = vmatpush2.bf16.msra.mxu0 %v6234_v46  ;;  %4220 = vmatprep.subr.bf16.mxu1 %v6239_v13 }
 0x282   :  { %4189 = vmatprep.subr.bf16.mxu0 %v6242_v49 }
 0x284   :  { %4221 = vmatpush1.bf16.msra.mxu1 %v6237_v21  ;;  %v6307_v21 = vld [vmem:[%s8198_s5 + $0x8] sm:$0xff]  }
 0x285   :  { %4190 = vmatpush2.bf16.msra.mxu0 %v6240_v50  ;;  %4222 = vmatprep.subr.bf16.mxu1 %v6245_v51 }
 0x286   :  { %4191 = vmatprep.subr.bf16.mxu0 %v6248_v53 }
 0x288   :  { %4223 = vmatpush1.bf16.msra.mxu1 %v6243_v54  ;;  %v6310_v54 = vld [vmem:[%s8198_s5 + $0xf8] sm:$0xff]  }
 0x289   :  { %4192 = vmatpush2.bf16.msra.mxu0 %v6246_v55  ;;  %4224 = vmatprep.subr.bf16.mxu1 %v6251_v56  ;;  %v6311_v55 = vld [vmem:[%s8198_s5 + $0xb8] sm:$0xff]  }
 0x28a   :  { %4193 = vmatprep.subr.bf16.mxu0 %v6254_v30 }
 0x28c   :  { %4225 = vmatpush1.bf16.msra.mxu1 %v6249_v40 }
 0x28d   :  { %4194 = vmatpush2.bf16.msra.mxu0 %v6252_v57  ;;  %4226 = vmatprep.subr.bf16.mxu1 %v6257_v60  ;;  %v6312_v57 = vld [vmem:[%s8198_s5 + $0xf0] sm:$0xff]  }
 0x28e   :  { %4195 = vmatprep.subr.bf16.mxu0 %v6260_v61  ;;  %v6313_v61 = vld [vmem:[%s8198_s5 + $0xb0] sm:$0xff]  }
 0x290   :  { %4227 = vmatpush1.bf16.msra.mxu1 %v6255_v62 }
 0x291   :  { %4196 = vmatpush2.bf16.msra.mxu0 %v6258_v63  ;;  %4228 = vmatprep.subr.bf16.mxu1 %v6263_v1  ;;  %v6314_v63 = vld [vmem:[%s8198_s5 + $0xe8] sm:$0xff]  }
 0x292   :  { %4197 = vmatprep.subr.bf16.mxu0 %v6266_v2  ;;  %v6315_v2 = vld [vmem:[%s8198_s5 + $0xa8] sm:$0xff]  }
 0x294   :  { %4229 = vmatpush2.bf16.msra.mxu1 %v6261_v3 }
 0x295   :  { %4198 = vmatpush2.bf16.msra.mxu0 %v6264_v5  ;;  %4230 = vmatprep.subr.bf16.mxu1 %v6269_v6  ;;  %v6316_v5 = vld [vmem:[%s8198_s5 + $0xe0] sm:$0xff]  }
 0x296   :  { %4199 = vmatprep.subr.bf16.mxu0 %v6272_v31  ;;  %v6317_v6 = vld [vmem:[%s8198_s5 + $0xa0] sm:$0xff]   ;;  %v6318_v31 = vld [vmem:[%s8198_s5 + $0xd8] sm:$0xff]  }
 0x298   :  { %4231 = vmatpush2.bf16.msra.mxu1 %v6267_v8  ;;  %v1789_v8 = vsub.s32 2, %v7678_v52 }
 0x299   :  { %4200 = vmatpush2.bf16.msra.mxu0 %v6270_v9  ;;  %4232 = vmatprep.subr.bf16.mxu1 %v6275_v10  ;;  %v6319_v9 = vld [vmem:[%s8198_s5 + $0x98] sm:$0xff]   ;;  %v6320_v10 = vld [vmem:[%s8198_s5 + $0xd0] sm:$0xff]  }
 0x29a   :  { %4201 = vmatprep.subr.bf16.mxu0 %v6278_v41  ;;  %v1793_v41 = vsub.s32 3, %v7678_v52  ;;  %v6323_v52 = vld [vmem:[%s8198_s5 + $0x88] sm:$0xff]  }
 0x29c   :  { %4233 = vmatpush2.bf16.msra.mxu1 %v6273_v59  ;;  %v1790_v59 = vrot.slane %v7699_v58, %v1789_v8 }
 0x29d   :  { %4202 = vmatpush2.bf16.msra.mxu0 %v6276_v12  ;;  %4234 = vmatprep.subr.bf16.mxu1 %v6281_v14  ;;  %v6321_v12 = vld [vmem:[%s8198_s5 + $0x90] sm:$0xff]   ;;  %v1794_v14 = vrot.slane %v7699_v58, %v1793_v41  ;;  %v6324_v58 = vld [vmem:[%s8198_s5 + $0xc0] sm:$0xff]  }
 0x29e   :  { %5298 = vmatprep.subr.bf16.mxu0 %v6282_v15 }
 0x2a0   :  { %4235 = vmatpush2.bf16.msra.mxu1 %v6279_v16  ;;  %v3959_v18 = vpop.f32.mrf.mxu0  ;;  %4204 = vmatmul.mubr.bf16.vlgmr.msra.gmra.mxu0 %v7445_v34  ;;  %v6292_v34 = vld [vmem:[%s8198_s5 + $0x68] sm:$0xff]  }
 0x2a1   :  { %5299 = vmatpush3.bf16.msra.mxu0 %v6283_v39  ;;  %4236 = vmatprep.subr.bf16.mxu1 %v6286_v17  ;;  %v3960_v46 = vadd.f32 %v3959_v18, %v7933_v29  ;;  %v6309_v29 = vld [vmem:[%s8198_s5] sm:$0xff]   ;;  %v6322_v39 = vld [vmem:[%s8198_s5 + $0xc8] sm:$0xff]  }
 0x2a2   :  { %v3961_v0 = vpop.f32.mrf.mxu0  ;;  %5300 = vmatprep.subr.bf16.mxu0 %v6287_v7 }
 0x2a3   :  { %v3962_v13 = vadd.f32 %v3961_v0, %v3921_v43 }
 0x2a4   :  { %4237 = vmatpush2.bf16.msra.mxu1 %v6284_v19  ;;  %v3963_v23 = vpop.f32.mrf.mxu0 }
 0x2a5   :  { %5301 = vmatpush3.bf16.msra.mxu0 %v6288_v20  ;;  %4238 = vmatprep.subr.bf16.mxu1 %v6291_v22  ;;  %v6325_v22 = vld [vmem:[%s8198_s5 + $0x80] sm:$0xff]  }
 0x2a6   :  { %v3964_v27 = vpop.f32.mrf.mxu0  ;;  %5302 = vmatprep.subr.bf16.mxu0 %v6292_v34 }
 0x2a8   :  { %4239 = vmatpush2.bf16.msra.mxu1 %v6289_v24 }
 0x2a9   :  { %5303 = vmatpush3.bf16.msra.mxu0 %v6293_v25  ;;  %4240 = vmatprep.subr.bf16.mxu1 %v6296_v26 }
 0x2aa   :  { %5304 = vmatprep.subr.bf16.mxu0 %v6297_v28 }
 0x2ac   :  { %4241 = vmatpush2.bf16.msra.mxu1 %v6294_v32 }
 0x2ad   :  { %5305 = vmatpush3.bf16.msra.mxu0 %v6298_v35  ;;  %4242 = vmatprep.subr.bf16.mxu1 %v6301_v4 }
 0x2ae   :  { %5306 = vmatprep.subr.bf16.mxu0 %v6302_v48 }
 0x2b0   :  { %4243 = vmatpush2.bf16.msra.mxu1 %v6299_v36 }
 0x2b1   :  { %5307 = vmatpush3.bf16.msra.mxu0 %v6303_v37  ;;  %5320 = vmatprep.subr.bf16.mxu1 %v6310_v54 }
 0x2b2   :  { %5308 = vmatprep.subr.bf16.mxu0 %v6304_v38 }
 0x2b3   :  { %4245 = vmatmul.mubr.bf16.vlgmr.msra.gmra.mxu1 %v7503_v47  ;;  %v4000_v45 = vpop.f32.mrf.mxu1 }
 0x2b4   :  { %v4001_v50 = vadd.f32 %v4000_v45, %v3960_v46  ;;  %5321 = vmatpush3.bf16.msra.mxu1 %v6311_v55 }
 0x2b5   :  { %v4002_v49 = vpop.f32.mrf.mxu1  ;;  %5309 = vmatpush3.bf16.msra.mxu0 %v6305_v42  ;;  %5322 = vmatprep.subr.bf16.mxu1 %v6312_v57 }
 0x2b6   :  { %v4003_v51 = vadd.f32 %v4002_v49, %v3962_v13  ;;  %5310 = vmatprep.subr.bf16.mxu0 %v6306_v44  ;;  %v4253_v56 = vmax.f32 %v4001_v50, 0.0 }
 0x2b7   :  { %v4004_v33 = vpop.f32.mrf.mxu1 }
 0x2b8   :  { %v4254_v53 = vmax.f32 %v4003_v51, 0.0  ;;  %v4257_v40 = vpack.c.bf16 %v4253_v56, %v4253_v56  ;;  %5323 = vmatpush3.bf16.msra.mxu1 %v6313_v61 }
 0x2b9   :  { %v4005_v47 = vpop.f32.mrf.mxu1  ;;  %5311 = vmatpush3.bf16.msra.mxu0 %v6307_v21  ;;  %5324 = vmatprep.subr.bf16.mxu1 %v6314_v63 }
 0x2ba   :  { %v4258_v30 = vpack.c.bf16 %v4254_v53, %v4254_v53  ;;  %5312 = vmatprep.subr.bf16.mxu0 %v6308_v11 }
 0x2bc   :  { %4556 = vmatprep.mubr.bf16.mxu0 %v4258_v30  ;;  %5325 = vmatpush3.bf16.msra.mxu1 %v6315_v2 }
 0x2bd   :  { %5313 = vmatpush3.bf16.msra.mxu0 %v6309_v29  ;;  %5326 = vmatprep.subr.bf16.mxu1 %v6316_v5 }
 0x2c0   :  { %4557 = vmatmul.mubr.bf16.vlgmr.msra.gmra.mxu0 %v4257_v40  ;;  %5327 = vmatpush3.bf16.msra.mxu1 %v6317_v6  ;;  %v5157_v40 = vld [vmem:[%s8199_s6] ss:$0 sm:$0xff]  ;;  %s6330_s6 = scalar_lea.vmem %s4622_s12, 128 }
 0x2c1   :  { %5328 = vmatprep.subr.bf16.mxu1 %v6318_v31  ;;  %p6331_p0 = scmp.ne.s32.totalorder %s4622_s12, %s6330_s6  ;;  %p6336_p2 = scmp.lt.s32.totalorder %s6330_s6, %s6330_s6 }
 0x2c3   :  { %p6337_p3 = por %p6336_p2, %p6335_p1 }
 0x2c4   :  { %5329 = vmatpush3.bf16.msra.mxu1 %v6319_v9 }
 0x2c5   :  { %5330 = vmatprep.subr.bf16.mxu1 %v6320_v10  ;;  %p6338_p4 = pnand %p6337_p3, %p6331_p0 }
 0x2c8   :  { %5331 = vmatpush3.bf16.msra.mxu1 %v6321_v12 }
 0x2c9   :  { %5332 = vmatprep.subr.bf16.mxu1 %v6322_v39 }
 0x2cc   :  { %5333 = vmatpush3.bf16.msra.mxu1 %v6323_v52 }
 0x2cd   :  { %5334 = vmatprep.subr.bf16.mxu1 %v6324_v58 }
 0x2d0   :  { %5335 = vmatpush3.bf16.msra.mxu1 %v6325_v22 }
 0x2e0   :  { %v4041_v60 = vpop.f32.mrf.mxu0 }
 0x2e1   :  { %v4042_v15 = vadd.f32 %v4041_v60, %v1790_v59 }
 0x2e2   :  { %v4043_v62 = vpop.f32.mrf.mxu0 }
 0x2e3   :  { %v4044_v17 = vadd.f32 %v4043_v62, %v1794_v14 }
 0x2e4   :  { %v4045_v1 = vpop.f32.mrf.mxu0 }
 0x2e6   :  { %v4046_v3 = vpop.f32.mrf.mxu0 }
 0x2f3   :  { %v4082_v16 = vpop.f32.mrf.mxu1 }
 0x2f4   :  { %v4083_v7 = vadd.f32 %v4082_v16, %v4042_v15 }
 0x2f5   :  { %v4084_v18 = vpop.f32.mrf.mxu1 }
 0x2f6   :  { %v4085_v19 = vadd.f32 %v4084_v18, %v4044_v17 }
 0x2f7   :  { %v4086_v20 = vpop.f32.mrf.mxu1 }
 0x2f9   :  { %v4087_v0 = vpop.f32.mrf.mxu1 }
 0x320   :  { %v4123_v34 = vpop.f32.mrf.mxu0 }
 0x321   :  { %v4124_v23 = vadd.f32 %v4123_v34, %v4083_v7 }
 0x322   :  { %v4125_v24 = vpop.f32.mrf.mxu0 }
 0x323   :  { %v4126_v25 = vadd.f32 %v4125_v24, %v4085_v19 }
 0x324   :  { %v4127_v26 = vpop.f32.mrf.mxu0 }
 0x326   :  { %v4128_v27 = vpop.f32.mrf.mxu0 }
 0x333   :  { %v4164_v28 = vpop.f32.mrf.mxu1 }
 0x334   :  { %v4165_v42 = vadd.f32 %v4164_v28, %v4124_v23 }
 0x335   :  { %v4166_v32 = vpop.f32.mrf.mxu1 }
 0x336   :  { %v4167_v43 = vadd.f32 %v4166_v32, %v4126_v25 }
 0x337   :  { %v4168_v35 = vpop.f32.mrf.mxu1 }
 0x339   :  { %v4169_v4 = vpop.f32.mrf.mxu1 }
 0x360   :  { %v4205_v48 = vpop.f32.mrf.mxu0 }
 0x361   :  { %v4206_v44 = vadd.f32 %v4205_v48, %v4165_v42 }
 0x362   :  { %v4207_v36 = vpop.f32.mrf.mxu0 }
 0x363   :  { %v4208_v46 = vadd.f32 %v4207_v36, %v4167_v43 }
 0x364   :  { %v4209_v37 = vpop.f32.mrf.mxu0 }
 0x366   :  { %v4210_v38 = vpop.f32.mrf.mxu0 }
 0x373   :  { %v4246_v45 = vpop.f32.mrf.mxu1 }
 0x374   :  { %v4247_v13 = vadd.f32 %v4246_v45, %v4206_v44 }
 0x375   :  { %v4248_v49 = vpop.f32.mrf.mxu1 }
 0x376   :  { %v4249_v21 = vadd.f32 %v4248_v49, %v4208_v46  ;;  %v4255_v50 = vmax.f32 %v4247_v13, 0.0 }
 0x377   :  { %v4250_v51 = vpop.f32.mrf.mxu1 }
 0x378   :  { %v4256_v11 = vmax.f32 %v4249_v21, 0.0  ;;  %v4259_v47 = vpack.c.bf16 %v4255_v50, %v4255_v50 }
 0x379   :  { %v4251_v33 = vpop.f32.mrf.mxu1 }
 0x37a   :  { %v4260_v53 = vpack.c.bf16 %v4256_v11, %v4256_v11 }
 0x37c   :  { %4596 = vmatprep.mubr.bf16.mxu1 %v4260_v53 }
 0x37d   :  { %4597 = vmatmul.mubr.bf16.vlgmr.msra.gmra.mxu1 %v4259_v47 }
 0x380   :  { %v5314_v29 = vpop.f32.mrf.mxu0 }
 0x382   :  { %v5315_v54 = vpop.f32.mrf.mxu0 }
 0x383   :  { %v5316_v55 = vadd.f32 %v5315_v54, %v5314_v29 }
 0x384   :  { %v5317_v56 = vpop.f32.mrf.mxu0 }
 0x385   :  { %v4559_v61 = vadd.f32 %v5316_v55, %v5157_v40 }
 0x386   :  { %v5318_v30 = vpop.f32.mrf.mxu0 }
 0x43d   :  { %v5336_v57 = vpop.f32.mrf.mxu1 }
 0x43f   :  { %v5337_v60 = vpop.f32.mrf.mxu1 }
 0x440   :  { %v5338_v62 = vadd.f32 %v5337_v60, %v5336_v57 }
 0x441   :  { %v5339_v63 = vpop.f32.mrf.mxu1 }
 0x442   :  { %v4599_v1 = vadd.f32 %v5338_v62, %v4559_v61 }
 0x443   :  { %v5340_v2 = vpop.f32.mrf.mxu1 }
 0x444   :  { %4604 = vmax.xlane.f32.xlu1 %v4599_v1 }
 0x4cd   :  { %v4605_v3 = vpop.xlane.xlu1 %4604 }
 0x4ce   :  { %v4606_v5 = vsub.f32 %v4599_v1, %v4605_v3 }
 0x4d0   :  { %v4607_v6 = vmul.f32 1.442695, %v4606_v5 }
 0x4d2   :  { %6326 = vpow2.f32 %v4607_v6 }
 0x4df   :  { %v6327_v31 = vpop.eup %6326 }
 0x4e0   :  { %4609 = vadd.xlane.f32.xlu0 %v6327_v31 }
 0x569   :  { %v4610_v8 = vpop.xlane.xlu0 %4609 }
 0x56a   :  { %6328 = vlog2.f32 %v4610_v8 }
 0x577   :  { %v6329_v9 = vpop.eup %6328 }
 0x578   :  { %v4612_v10 = vmul.f32 0.6931472, %v6329_v9 }
 0x57a   :  { %v4613_v41 = vsub.f32 %v4606_v5, %v4612_v10 }
 0x57c   :  { %4614 = vst [vmem:[#allocation3] sm:$0xff] %v4613_v41 }
 0x57d   :  { %6341 = shalt.err (!%p6338_p4)
}
 0x57e   :  { %4624 = dma.vmem_to_hbm [thread:$0]  %s4622_s12, 128, %s8200_s7, [#allocation4]  }
 0x57f   :  { %6350 = dma.done.wait [#allocation4], 128  }
 0x580   :  { %6351 = vsyncadd [#allocation4], 4294967168 }
 0x581   :  { %4628 = vsyncpa [#allocation4], 1 }

</bundles_post_ra>
